<compile_context>
chip_gen: v6e
topology: v6e:2x2x1
jax: 0.10.0
libtpu: 0.0.40
codegen_flags: <defaults>
</compile_context>

<pallas_src>
import functools

import jax
import jax.numpy as jnp
from jax.experimental import pallas as pl
from jax.experimental.pallas import tpu as pltpu


def _layer_norm(x, g, b, eps=1e-5):
    mu = jnp.mean(x, axis=-1, keepdims=True)
    var = jnp.mean(jnp.square(x - mu), axis=-1, keepdims=True)
    return (x - mu) * jax.lax.rsqrt(var + eps) * g + b


def _gelu_exact(x):
    # nn.GELU() default = exact erf-based GELU (kept for parity with the spec).
    return 0.5 * x * (1.0 + jax.lax.erf(x * (1.0 / jnp.sqrt(jnp.float32(2.0)))))


def transformer_kernel(x_ref,
                       ln1_g_ref, ln1_b_ref,
                       wqkv_ref, bqkv_ref,
                       wo_ref, bo_ref,
                       ln2_g_ref, ln2_b_ref,
                       w1_ref, b1_ref, w2_ref, b2_ref,
                       o_ref, *, heads, dim_head):
    """One grid step = (batch tile, layer).  Activation is carried in o_ref."""
    inner = heads * dim_head
    cdt = jnp.bfloat16          # MXU input dtype; accumulation stays f32

    # Depth-axis carry: initialize the resident output block from the input at
    # layer 0, then read/modify/write it every layer (no inter-layer HBM trips).
    @pl.when(pl.program_id(1) == 0)
    def _():
        o_ref[...] = x_ref[...]

    x = o_ref[...]                              # (Bt, L, D) f32, resident in VMEM
    bt, seq, d_model = x.shape
    m = bt * seq
    xf = x.reshape(m, d_model)                  # flatten batch tile for matmuls

    # ---------------- PreNorm + Attention ----------------
    xn = _layer_norm(xf, ln1_g_ref[0], ln1_b_ref[0])
    # Fused QKV projection over the whole batch tile (MXU M-dim = Bt*L).  The
    # 1/sqrt(dim_head) attention scale is already folded into the q columns of
    # wqkv / bqkv at pack_params time.
    qkv = jnp.dot(xn.astype(cdt), wqkv_ref[0],
                  preferred_element_type=jnp.float32) + bqkv_ref[0]     # (M, 3*inner)
    qkv3 = qkv.reshape(bt, seq, 3 * inner)

    def gather_heads(base):
        # Per-head lane slice -> (heads*Bt, L, dh), head-major on the leading
        # batch axis of the batched attention einsums below.
        parts = [qkv3[:, :, base + h * dim_head: base + (h + 1) * dim_head]
                 for h in range(heads)]
        out = parts[0] if heads == 1 else jnp.concatenate(parts, axis=0)
        return out.astype(cdt)

    qs = gather_heads(0)
    ks = gather_heads(inner)
    vs = gather_heads(2 * inner)

    s = jnp.einsum('bqd,bkd->bqk', qs, ks,
                   preferred_element_type=jnp.float32)       # (H*Bt, L, L) f32
    s = s - jnp.max(s, axis=-1, keepdims=True)
    p = jnp.exp(s)
    # Approximate reciprocal (EUP slot): softmax rows sum to 1 only to ~2^-12.
    # Intentional inference-only approximation.
    p = p * pl.reciprocal(jnp.sum(p, axis=-1, keepdims=True), approx=True)
    # TODO(synk): attention-prob / projection dropout is identity (eval mode).
    av = jnp.einsum('bqk,bkd->bqd', p.astype(cdt), vs,
                    preferred_element_type=jnp.float32)       # (H*Bt, L, dh) f32

    # Head merge folded into the output projection: sum_h av_h @ wo_h, with wo
    # packed as (H, dh, D).  Avoids the H-way lane concat of dh-wide slices.
    # NOTE: the PyTorch source does `av.reshape(shape)` (a raw reshape, not the
    # inverse rearrange), which scrambles head/position when heads > 1; we
    # implement the standard head merge (identical for heads == 1, the default).
    attn = None
    for h in range(heads):
        avh = av[h * bt:(h + 1) * bt].reshape(m, dim_head).astype(cdt)
        ph = jnp.dot(avh, wo_ref[0, h], preferred_element_type=jnp.float32)
        attn = ph if attn is None else attn + ph
    xf = xf + attn + bo_ref[0]                                # residual (f32)

    # ---------------- PreNorm + FeedForward ----------------
    xn2 = _layer_norm(xf, ln2_g_ref[0], ln2_b_ref[0])
    h1 = _gelu_exact(jnp.dot(xn2.astype(cdt), w1_ref[0],
                             preferred_element_type=jnp.float32) + b1_ref[0])
    ff = jnp.dot(h1.astype(cdt), w2_ref[0],
                 preferred_element_type=jnp.float32) + b2_ref[0]

    o_ref[...] = (xf + ff).reshape(bt, seq, d_model)          # residual (f32)


def _pick_vmem_limit():
    """Generation-aware VMEM budget: ~3/4 of per-core capacity, capped at 100 MiB.
    (~48 MiB on v7x's 64 MiB/TC, ~96 MiB on v5e/v6e's 128 MiB)."""
    try:
        cap = int(pltpu.get_tpu_info().vmem_capacity_bytes)
        if cap <= 0:
            raise ValueError
    except Exception:
        cap = 64 * 1024 * 1024          # conservative fallback (v7x per-TC)
    return min((cap * 3) // 4, 100 * 1024 * 1024)


def transformer_forward(x, params, *, heads, dim_head,
                        batch_tile=None, vmem_limit_bytes=None):
    """x: (B, L, D) f32.  params: stacked-per-layer dict (see pack_params)."""
    B, L, D = x.shape
    depth = params["wqkv"].shape[0]

    if batch_tile is None:
        batch_tile = min(B, 8)          # ~4-8 on v5e/v6e, 2-4 on v7x
    batch_tile = max(1, min(batch_tile, B))
    while B % batch_tile:
        batch_tile -= 1
    Bt = batch_tile

    if vmem_limit_bytes is None:
        vmem_limit_bytes = _pick_vmem_limit()

    args = [params["ln1_g"], params["ln1_b"],
            params["wqkv"], params["bqkv"],
            params["wo"], params["bo"],
            params["ln2_g"], params["ln2_b"],
            params["w1"], params["b1"], params["w2"], params["b2"]]

    def stacked_spec(a):
        # (depth, ...) arrays: one layer's slab per depth grid step.
        return pl.BlockSpec((1,) + a.shape[1:],
                            lambda b, d, nd=a.ndim: (d,) + (0,) * (nd - 1))

    in_specs = [pl.BlockSpec((Bt, L, D), lambda b, d: (b, 0, 0))] + \
               [stacked_spec(a) for a in args]

    kernel = functools.partial(transformer_kernel, heads=heads, dim_head=dim_head)
    return pl.pallas_call(
        kernel,
        out_shape=jax.ShapeDtypeStruct((B, L, D), jnp.float32),
        grid=(B // Bt, depth),
        in_specs=in_specs,
        # Same output block index across the depth axis -> activation stays
        # resident in VMEM across all layers for a given batch tile.
        out_specs=pl.BlockSpec((Bt, L, D), lambda b, d: (b, 0, 0)),
        compiler_params=pltpu.CompilerParams(
            dimension_semantics=("parallel", "arbitrary"),
            vmem_limit_bytes=int(vmem_limit_bytes),
        ),
    )(x, *args)


# -------- parameter construction --------
def _init_layer(key, in_dim, dim_head, heads, mlp_dim):
    inner = dim_head * heads
    ks = jax.random.split(key, 6)
    s = 0.05
    return {
        "ln1_g": jnp.ones((1, in_dim), jnp.float32),
        "ln1_b": jnp.zeros((1, in_dim), jnp.float32),
        "wq": s * jax.random.normal(ks[0], (in_dim, inner), jnp.float32),
        "bq": jnp.zeros((1, inner), jnp.float32),
        "wk": s * jax.random.normal(ks[1], (in_dim, inner), jnp.float32),
        "bk": jnp.zeros((1, inner), jnp.float32),
        "wv": s * jax.random.normal(ks[2], (in_dim, inner), jnp.float32),
        "bv": jnp.zeros((1, inner), jnp.float32),
        "wo": s * jax.random.normal(ks[3], (inner, in_dim), jnp.float32),
        "bo": jnp.zeros((1, in_dim), jnp.float32),
        "ln2_g": jnp.ones((1, in_dim), jnp.float32),
        "ln2_b": jnp.zeros((1, in_dim), jnp.float32),
        "w1": s * jax.random.normal(ks[4], (in_dim, mlp_dim), jnp.float32),
        "b1": jnp.zeros((1, mlp_dim), jnp.float32),
        "w2": s * jax.random.normal(ks[5], (mlp_dim, in_dim), jnp.float32),
        "b2": jnp.zeros((1, in_dim), jnp.float32),
    }


def pack_params(layers, *, heads, dim_head, compute_dtype=jnp.bfloat16):
    """Fuse Q|K|V (with the attention scale folded into the q columns), reshape
    wo to (H, dh, D) for the head-fused output projection, and stack everything
    along a leading depth axis.  Weights in bf16, LN params / biases in f32."""
    scale = 1.0 / (dim_head ** 0.5)

    def st(name):
        return jnp.stack([l[name] for l in layers], axis=0)

    wqkv = jnp.stack([jnp.concatenate([l["wq"] * scale, l["wk"], l["wv"]], axis=1)
                      for l in layers], axis=0)
    bqkv = jnp.stack([jnp.concatenate([l["bq"] * scale, l["bk"], l["bv"]], axis=1)
                      for l in layers], axis=0)
    wo = jnp.stack([l["wo"].reshape(heads, dim_head, l["wo"].shape[1])
                    for l in layers], axis=0)
    return {
        "ln1_g": st("ln1_g"), "ln1_b": st("ln1_b"),
        "wqkv": wqkv.astype(compute_dtype), "bqkv": bqkv,
        "wo": wo.astype(compute_dtype), "bo": st("bo"),
        "ln2_g": st("ln2_g"), "ln2_b": st("ln2_b"),
        "w1": st("w1").astype(compute_dtype), "b1": st("b1"),
        "w2": st("w2").astype(compute_dtype), "b2": st("b2"),
    }


# -------- pure-JAX f32 reference (for correctness check) --------
def _ref_layer(x, p, heads, dim_head):
    def ln(x, g, b):
        mu = x.mean(-1, keepdims=True)
        var = ((x - mu) ** 2).mean(-1, keepdims=True)
        return (x - mu) / jnp.sqrt(var + 1e-5) * g + b

    B, L, D = x.shape
    xn = ln(x, p["ln1_g"], p["ln1_b"])
    q = xn @ p["wq"] + p["bq"]
    k = xn @ p["wk"] + p["bk"]
    v = xn @ p["wv"] + p["bv"]
    q = q.reshape(B, L, heads, dim_head).transpose(0, 2, 1, 3)
    k = k.reshape(B, L, heads, dim_head).transpose(0, 2, 1, 3)
    v = v.reshape(B, L, heads, dim_head).transpose(0, 2, 1, 3)
    a = jnp.einsum("bhqd,bhkd->bhqk", q, k) / (dim_head ** 0.5)
    a = jax.nn.softmax(a, axis=-1)
    av = jnp.einsum("bhqk,bhkd->bhqd", a, v).transpose(0, 2, 1, 3).reshape(B, L, heads * dim_head)
    x = x + (av @ p["wo"] + p["bo"])
    xn2 = ln(x, p["ln2_g"], p["ln2_b"])
    h1 = jax.nn.gelu(xn2 @ p["w1"] + p["b1"], approximate=False)
    return x + (h1 @ p["w2"] + p["b2"])


if __name__ == "__main__":
    # Small but TPU-layout-friendly shapes (D, inner, mlp multiples of 128;
    # L multiple of 8).  batch_tile=2 exercises grid=(2, depth) batch tiling.
    B, L = 4, 16              # batch, sequence
    in_dim = 128              # embedding dim
    heads, dim_head = 2, 64   # attention config (inner = 128)
    mlp_dim = 256
    depth = 2

    key = jax.random.PRNGKey(0)
    kx, *kl = jax.random.split(key, depth + 1)
    x = jax.random.normal(kx, (B, L, in_dim), jnp.float32)
    layers = [_init_layer(k, in_dim, dim_head, heads, mlp_dim) for k in kl]
    params = pack_params(layers, heads=heads, dim_head=dim_head)

    out = transformer_forward(x, params, heads=heads, dim_head=dim_head, batch_tile=2)
    out = jax.block_until_ready(out)

    ref = x
    for p in layers:
        ref = _ref_layer(ref, p, heads, dim_head)

    max_err = float(jnp.max(jnp.abs(out - ref)))
    # bf16 MXU inputs + approx reciprocal -> looser tolerance than pure f32.
    assert jnp.allclose(out, ref, atol=5e-2, rtol=5e-2), \
        f"mismatch vs reference (max_abs_err={max_err})"

    print("KERNEL_OK")
</pallas_src>

<mosaic_0001>
module attributes {stable_mosaic.version = 11 : i64} {
  func.func @transformer_kernel(%arg0: i32, %arg1: i32, %arg2: memref<2x16x128xf32, #tpu.memory_space<vmem>>, %arg3: memref<1x1x128xf32, #tpu.memory_space<vmem>>, %arg4: memref<1x1x128xf32, #tpu.memory_space<vmem>>, %arg5: memref<1x128x384xbf16, #tpu.memory_space<vmem>>, %arg6: memref<1x1x384xf32, #tpu.memory_space<vmem>>, %arg7: memref<1x2x64x128xbf16, #tpu.memory_space<vmem>>, %arg8: memref<1x1x128xf32, #tpu.memory_space<vmem>>, %arg9: memref<1x1x128xf32, #tpu.memory_space<vmem>>, %arg10: memref<1x1x128xf32, #tpu.memory_space<vmem>>, %arg11: memref<1x128x256xbf16, #tpu.memory_space<vmem>>, %arg12: memref<1x1x256xf32, #tpu.memory_space<vmem>>, %arg13: memref<1x256x128xbf16, #tpu.memory_space<vmem>>, %arg14: memref<1x1x128xf32, #tpu.memory_space<vmem>>, %arg15: memref<2x16x128xf32, #tpu.memory_space<vmem>>) attributes {dimension_semantics = [#tpu.dimension_semantics<parallel>, #tpu.dimension_semantics<arbitrary>], iteration_bounds = array<i64: 2, 2>, scalar_prefetch = 0 : i64, scratch_operands = 0 : i64, tpu.core_type = #tpu.core_type<tc>, window_params = [{transform_indices = @transform_0, window_bounds = array<i64: 2, 16, 128>}, {transform_indices = @transform_1, window_bounds = array<i64: 1, 1, 128>}, {transform_indices = @transform_2, window_bounds = array<i64: 1, 1, 128>}, {transform_indices = @transform_3, window_bounds = array<i64: 1, 128, 384>}, {transform_indices = @transform_4, window_bounds = array<i64: 1, 1, 384>}, {transform_indices = @transform_5, window_bounds = array<i64: 1, 2, 64, 128>}, {transform_indices = @transform_6, window_bounds = array<i64: 1, 1, 128>}, {transform_indices = @transform_7, window_bounds = array<i64: 1, 1, 128>}, {transform_indices = @transform_8, window_bounds = array<i64: 1, 1, 128>}, {transform_indices = @transform_9, window_bounds = array<i64: 1, 128, 256>}, {transform_indices = @transform_10, window_bounds = array<i64: 1, 1, 256>}, {transform_indices = @transform_11, window_bounds = array<i64: 1, 256, 128>}, {transform_indices = @transform_12, window_bounds = array<i64: 1, 1, 128>}, {transform_indices = @transform_13, window_bounds = array<i64: 2, 16, 128>}]} {
    %c0_i32 = arith.constant 0 : i32
    %0 = arith.cmpi eq, %arg1, %c0_i32 : i32
    %1 = arith.extui %0 : i1 to i32
    %c0_i32_0 = arith.constant 0 : i32
    %2 = arith.cmpi ne, %1, %c0_i32_0 : i32
    scf.if %2 {
      %c0_68 = arith.constant 0 : index
      %c0_69 = arith.constant 0 : index
      %c0_70 = arith.constant 0 : index
      %138 = vector.load %arg2[%c0_68, %c0_69, %c0_70] : memref<2x16x128xf32, #tpu.memory_space<vmem>>, vector<2x16x128xf32>
      %c0_71 = arith.constant 0 : index
      %c0_72 = arith.constant 0 : index
      %c0_73 = arith.constant 0 : index
      %139 = vector.load %arg15[%c0_71, %c0_72, %c0_73] : memref<2x16x128xf32, #tpu.memory_space<vmem>>, vector<2x16x128xf32>
      tpu.vector_store %arg15[%c0_71, %c0_72, %c0_73], %138 {strides = array<i32>} : memref<2x16x128xf32, #tpu.memory_space<vmem>>, vector<2x16x128xf32>,
    } else {
    }
    %c0 = arith.constant 0 : index
    %c0_1 = arith.constant 0 : index
    %c0_2 = arith.constant 0 : index
    %3 = vector.load %arg15[%c0, %c0_1, %c0_2] : memref<2x16x128xf32, #tpu.memory_space<vmem>>, vector<2x16x128xf32>
    %4 = vector.shape_cast %3 : vector<2x16x128xf32> to vector<32x128xf32>
    %c0_3 = arith.constant 0 : index
    %c0_4 = arith.constant 0 : index
    %c0_5 = arith.constant 0 : index
    %5 = vector.load %arg3[%c0_3, %c0_4, %c0_5] : memref<1x1x128xf32, #tpu.memory_space<vmem>>, vector<1x1x128xf32>
    %6 = vector.shape_cast %5 : vector<1x1x128xf32> to vector<1x128xf32>
    %c0_6 = arith.constant 0 : index
    %c0_7 = arith.constant 0 : index
    %c0_8 = arith.constant 0 : index
    %7 = vector.load %arg4[%c0_6, %c0_7, %c0_8] : memref<1x1x128xf32, #tpu.memory_space<vmem>>, vector<1x1x128xf32>
    %8 = vector.shape_cast %7 : vector<1x1x128xf32> to vector<1x128xf32>
    %cst = arith.constant dense<0.000000e+00> : vector<32xf32>
    %9 = vector.multi_reduction <add>, %4, %cst [1] : vector<32x128xf32> to vector<32xf32>
    %10 = vector.shape_cast %9 : vector<32xf32> to vector<32x1xf32>
    %cst_9 = arith.constant 1.280000e+02 : f32
    %11 = vector.broadcast %cst_9 : f32 to vector<32x1xf32>
    %12 = arith.divf %10, %11 : vector<32x1xf32>
    %13 = vector.broadcast %12 : vector<32x1xf32> to vector<32x128xf32>
    %14 = arith.subf %4, %13 : vector<32x128xf32>
    %15 = arith.mulf %14, %14 : vector<32x128xf32>
    %cst_10 = arith.constant dense<0.000000e+00> : vector<32xf32>
    %16 = vector.multi_reduction <add>, %15, %cst_10 [1] : vector<32x128xf32> to vector<32xf32>
    %17 = vector.shape_cast %16 : vector<32xf32> to vector<32x1xf32>
    %cst_11 = arith.constant 1.280000e+02 : f32
    %18 = vector.broadcast %cst_11 : f32 to vector<32x1xf32>
    %19 = arith.divf %17, %18 : vector<32x1xf32>
    %20 = vector.broadcast %12 : vector<32x1xf32> to vector<32x128xf32>
    %21 = arith.subf %4, %20 : vector<32x128xf32>
    %cst_12 = arith.constant 9.99999974E-6 : f32
    %22 = vector.broadcast %cst_12 : f32 to vector<32x1xf32>
    %23 = arith.addf %19, %22 : vector<32x1xf32>
    %24 = math.rsqrt %23 : vector<32x1xf32>
    %25 = vector.broadcast %24 : vector<32x1xf32> to vector<32x128xf32>
    %26 = arith.mulf %21, %25 : vector<32x128xf32>
    %27 = vector.broadcast %6 : vector<1x128xf32> to vector<32x128xf32>
    %28 = arith.mulf %26, %27 : vector<32x128xf32>
    %29 = vector.broadcast %8 : vector<1x128xf32> to vector<32x128xf32>
    %30 = arith.addf %28, %29 : vector<32x128xf32>
    %31 = arith.truncf %30 : vector<32x128xf32> to vector<32x128xbf16>
    %c0_13 = arith.constant 0 : index
    %c0_14 = arith.constant 0 : index
    %c0_15 = arith.constant 0 : index
    %32 = vector.load %arg5[%c0_13, %c0_14, %c0_15] : memref<1x128x384xbf16, #tpu.memory_space<vmem>>, vector<1x128x384xbf16>
    %33 = vector.shape_cast %32 : vector<1x128x384xbf16> to vector<128x384xbf16>
    %cst_16 = arith.constant dense<0.000000e+00> : vector<32x384xf32>
    %34 = tpu.matmul %31, %33, %cst_16 {dimension_numbers = #tpu.dot_dimension_numbers<[1], [0], [0], [1], [0, 0, 1, 1], [], []>} : vector<32x128xbf16>, vector<128x384xbf16>, vector<32x384xf32> -> vector<32x384xf32>
    %c0_17 = arith.constant 0 : index
    %c0_18 = arith.constant 0 : index
    %c0_19 = arith.constant 0 : index
    %35 = vector.load %arg6[%c0_17, %c0_18, %c0_19] : memref<1x1x384xf32, #tpu.memory_space<vmem>>, vector<1x1x384xf32>
    %36 = vector.shape_cast %35 : vector<1x1x384xf32> to vector<1x384xf32>
    %37 = vector.broadcast %36 : vector<1x384xf32> to vector<32x384xf32>
    %38 = arith.addf %34, %37 : vector<32x384xf32>
    %39 = vector.shape_cast %38 : vector<32x384xf32> to vector<2x16x384xf32>
    %40 = vector.extract_strided_slice %39 {offsets = [0, 0, 0], sizes = [2, 16, 64], strides = [1, 1, 1]} : vector<2x16x384xf32> to vector<2x16x64xf32>
    %41 = vector.extract_strided_slice %39 {offsets = [0, 0, 64], sizes = [2, 16, 64], strides = [1, 1, 1]} : vector<2x16x384xf32> to vector<2x16x64xf32>
    %42 = tpu.concatenate %40, %41 in 0 : vector<2x16x64xf32>, vector<2x16x64xf32> -> vector<4x16x64xf32>
    %43 = arith.truncf %42 : vector<4x16x64xf32> to vector<4x16x64xbf16>
    %44 = vector.extract_strided_slice %39 {offsets = [0, 0, 128], sizes = [2, 16, 64], strides = [1, 1, 1]} : vector<2x16x384xf32> to vector<2x16x64xf32>
    %45 = vector.extract_strided_slice %39 {offsets = [0, 0, 192], sizes = [2, 16, 64], strides = [1, 1, 1]} : vector<2x16x384xf32> to vector<2x16x64xf32>
    %46 = tpu.concatenate %44, %45 in 0 : vector<2x16x64xf32>, vector<2x16x64xf32> -> vector<4x16x64xf32>
    %47 = arith.truncf %46 : vector<4x16x64xf32> to vector<4x16x64xbf16>
    %48 = vector.extract_strided_slice %39 {offsets = [0, 0, 256], sizes = [2, 16, 64], strides = [1, 1, 1]} : vector<2x16x384xf32> to vector<2x16x64xf32>
    %49 = vector.extract_strided_slice %39 {offsets = [0, 0, 320], sizes = [2, 16, 64], strides = [1, 1, 1]} : vector<2x16x384xf32> to vector<2x16x64xf32>
    %50 = tpu.concatenate %48, %49 in 0 : vector<2x16x64xf32>, vector<2x16x64xf32> -> vector<4x16x64xf32>
    %51 = arith.truncf %50 : vector<4x16x64xf32> to vector<4x16x64xbf16>
    "tpu.trace_start"() <{level = 10 : i32, message = "bqd,bkd->bqk"}> : () -> ()
    %cst_20 = arith.constant dense<0.000000e+00> : vector<4x16x16xf32>
    %52 = tpu.matmul %43, %47, %cst_20 {dimension_numbers = #tpu.dot_dimension_numbers<[2], [2], [1], [1], [0, 0, 0, 1, 1, 1], [0], [0]>} : vector<4x16x64xbf16>, vector<4x16x64xbf16>, vector<4x16x16xf32> -> vector<4x16x16xf32>
    "tpu.trace_stop"() : () -> ()
    %cst_21 = arith.constant dense<0xFF800000> : vector<4x16xf32>
    %53 = vector.multi_reduction <maximumf>, %52, %cst_21 [2] : vector<4x16x16xf32> to vector<4x16xf32>
    %54 = vector.shape_cast %53 : vector<4x16xf32> to vector<4x16x1xf32>
    %55 = vector.broadcast %54 : vector<4x16x1xf32> to vector<4x16x16xf32>
    %56 = arith.subf %52, %55 : vector<4x16x16xf32>
    %57 = math.exp %56 : vector<4x16x16xf32>
    %cst_22 = arith.constant dense<0.000000e+00> : vector<4x16xf32>
    %58 = vector.multi_reduction <add>, %57, %cst_22 [2] : vector<4x16x16xf32> to vector<4x16xf32>
    %59 = vector.shape_cast %58 : vector<4x16xf32> to vector<4x16x1xf32>
    %60 = tpu.reciprocal %59 {approx = true} : vector<4x16x1xf32> -> vector<4x16x1xf32>
    %61 = vector.broadcast %60 : vector<4x16x1xf32> to vector<4x16x16xf32>
    %62 = arith.mulf %57, %61 : vector<4x16x16xf32>
    %63 = arith.truncf %62 : vector<4x16x16xf32> to vector<4x16x16xbf16>
    "tpu.trace_start"() <{level = 10 : i32, message = "bqk,bkd->bqd"}> : () -> ()
    %cst_23 = arith.constant dense<0.000000e+00> : vector<4x16x64xf32>
    %64 = tpu.matmul %63, %51, %cst_23 {dimension_numbers = #tpu.dot_dimension_numbers<[2], [1], [1], [2], [0, 0, 0, 1, 1, 2], [0], [0]>} : vector<4x16x16xbf16>, vector<4x16x64xbf16>, vector<4x16x64xf32> -> vector<4x16x64xf32>
    "tpu.trace_stop"() : () -> ()
    %65 = vector.extract_strided_slice %64 {offsets = [0, 0, 0], sizes = [2, 16, 64], strides = [1, 1, 1]} : vector<4x16x64xf32> to vector<2x16x64xf32>
    %66 = vector.shape_cast %65 : vector<2x16x64xf32> to vector<32x64xf32>
    %67 = arith.truncf %66 : vector<32x64xf32> to vector<32x64xbf16>
    %c0_24 = arith.constant 0 : index
    %c0_25 = arith.constant 0 : index
    %c0_26 = arith.constant 0 : index
    %c0_27 = arith.constant 0 : index
    %68 = vector.load %arg7[%c0_24, %c0_25, %c0_26, %c0_27] : memref<1x2x64x128xbf16, #tpu.memory_space<vmem>>, vector<1x1x64x128xbf16>
    %69 = vector.shape_cast %68 : vector<1x1x64x128xbf16> to vector<64x128xbf16>
    %cst_28 = arith.constant dense<0.000000e+00> : vector<32x128xf32>
    %70 = tpu.matmul %67, %69, %cst_28 {dimension_numbers = #tpu.dot_dimension_numbers<[1], [0], [0], [1], [0, 0, 1, 1], [], []>} : vector<32x64xbf16>, vector<64x128xbf16>, vector<32x128xf32> -> vector<32x128xf32>
    %71 = vector.extract_strided_slice %64 {offsets = [2, 0, 0], sizes = [2, 16, 64], strides = [1, 1, 1]} : vector<4x16x64xf32> to vector<2x16x64xf32>
    %72 = vector.shape_cast %71 : vector<2x16x64xf32> to vector<32x64xf32>
    %73 = arith.truncf %72 : vector<32x64xf32> to vector<32x64xbf16>
    %c0_29 = arith.constant 0 : index
    %c1 = arith.constant 1 : index
    %c0_30 = arith.constant 0 : index
    %c0_31 = arith.constant 0 : index
    %74 = vector.load %arg7[%c0_29, %c1, %c0_30, %c0_31] : memref<1x2x64x128xbf16, #tpu.memory_space<vmem>>, vector<1x1x64x128xbf16>
    %75 = vector.shape_cast %74 : vector<1x1x64x128xbf16> to vector<64x128xbf16>
    %cst_32 = arith.constant dense<0.000000e+00> : vector<32x128xf32>
    %76 = tpu.matmul %73, %75, %cst_32 {dimension_numbers = #tpu.dot_dimension_numbers<[1], [0], [0], [1], [0, 0, 1, 1], [], []>} : vector<32x64xbf16>, vector<64x128xbf16>, vector<32x128xf32> -> vector<32x128xf32>
    %77 = arith.addf %70, %76 : vector<32x128xf32>
    %78 = arith.addf %4, %77 : vector<32x128xf32>
    %c0_33 = arith.constant 0 : index
    %c0_34 = arith.constant 0 : index
    %c0_35 = arith.constant 0 : index
    %79 = vector.load %arg8[%c0_33, %c0_34, %c0_35] : memref<1x1x128xf32, #tpu.memory_space<vmem>>, vector<1x1x128xf32>
    %80 = vector.shape_cast %79 : vector<1x1x128xf32> to vector<1x128xf32>
    %81 = vector.broadcast %80 : vector<1x128xf32> to vector<32x128xf32>
    %82 = arith.addf %78, %81 : vector<32x128xf32>
    %c0_36 = arith.constant 0 : index
    %c0_37 = arith.constant 0 : index
    %c0_38 = arith.constant 0 : index
    %83 = vector.load %arg9[%c0_36, %c0_37, %c0_38] : memref<1x1x128xf32, #tpu.memory_space<vmem>>, vector<1x1x128xf32>
    %84 = vector.shape_cast %83 : vector<1x1x128xf32> to vector<1x128xf32>
    %c0_39 = arith.constant 0 : index
    %c0_40 = arith.constant 0 : index
    %c0_41 = arith.constant 0 : index
    %85 = vector.load %arg10[%c0_39, %c0_40, %c0_41] : memref<1x1x128xf32, #tpu.memory_space<vmem>>, vector<1x1x128xf32>
    %86 = vector.shape_cast %85 : vector<1x1x128xf32> to vector<1x128xf32>
    %cst_42 = arith.constant dense<0.000000e+00> : vector<32xf32>
    %87 = vector.multi_reduction <add>, %82, %cst_42 [1] : vector<32x128xf32> to vector<32xf32>
    %88 = vector.shape_cast %87 : vector<32xf32> to vector<32x1xf32>
    %cst_43 = arith.constant 1.280000e+02 : f32
    %89 = vector.broadcast %cst_43 : f32 to vector<32x1xf32>
    %90 = arith.divf %88, %89 : vector<32x1xf32>
    %91 = vector.broadcast %90 : vector<32x1xf32> to vector<32x128xf32>
    %92 = arith.subf %82, %91 : vector<32x128xf32>
    %93 = arith.mulf %92, %92 : vector<32x128xf32>
    %cst_44 = arith.constant dense<0.000000e+00> : vector<32xf32>
    %94 = vector.multi_reduction <add>, %93, %cst_44 [1] : vector<32x128xf32> to vector<32xf32>
    %95 = vector.shape_cast %94 : vector<32xf32> to vector<32x1xf32>
    %cst_45 = arith.constant 1.280000e+02 : f32
    %96 = vector.broadcast %cst_45 : f32 to vector<32x1xf32>
    %97 = arith.divf %95, %96 : vector<32x1xf32>
    %98 = vector.broadcast %90 : vector<32x1xf32> to vector<32x128xf32>
    %99 = arith.subf %82, %98 : vector<32x128xf32>
    %cst_46 = arith.constant 9.99999974E-6 : f32
    %100 = vector.broadcast %cst_46 : f32 to vector<32x1xf32>
    %101 = arith.addf %97, %100 : vector<32x1xf32>
    %102 = math.rsqrt %101 : vector<32x1xf32>
    %103 = vector.broadcast %102 : vector<32x1xf32> to vector<32x128xf32>
    %104 = arith.mulf %99, %103 : vector<32x128xf32>
    %105 = vector.broadcast %84 : vector<1x128xf32> to vector<32x128xf32>
    %106 = arith.mulf %104, %105 : vector<32x128xf32>
    %107 = vector.broadcast %86 : vector<1x128xf32> to vector<32x128xf32>
    %108 = arith.addf %106, %107 : vector<32x128xf32>
    %109 = arith.truncf %108 : vector<32x128xf32> to vector<32x128xbf16>
    %c0_47 = arith.constant 0 : index
    %c0_48 = arith.constant 0 : index
    %c0_49 = arith.constant 0 : index
    %110 = vector.load %arg11[%c0_47, %c0_48, %c0_49] : memref<1x128x256xbf16, #tpu.memory_space<vmem>>, vector<1x128x256xbf16>
    %111 = vector.shape_cast %110 : vector<1x128x256xbf16> to vector<128x256xbf16>
    %cst_50 = arith.constant dense<0.000000e+00> : vector<32x256xf32>
    %112 = tpu.matmul %109, %111, %cst_50 {dimension_numbers = #tpu.dot_dimension_numbers<[1], [0], [0], [1], [0, 0, 1, 1], [], []>} : vector<32x128xbf16>, vector<128x256xbf16>, vector<32x256xf32> -> vector<32x256xf32>
    %c0_51 = arith.constant 0 : index
    %c0_52 = arith.constant 0 : index
    %c0_53 = arith.constant 0 : index
    %113 = vector.load %arg12[%c0_51, %c0_52, %c0_53] : memref<1x1x256xf32, #tpu.memory_space<vmem>>, vector<1x1x256xf32>
    %114 = vector.shape_cast %113 : vector<1x1x256xf32> to vector<1x256xf32>
    %115 = vector.broadcast %114 : vector<1x256xf32> to vector<32x256xf32>
    %116 = arith.addf %112, %115 : vector<32x256xf32>
    %cst_54 = arith.constant 5.000000e-01 : f32
    %117 = vector.broadcast %cst_54 : f32 to vector<32x256xf32>
    %118 = arith.mulf %117, %116 : vector<32x256xf32>
    %cst_55 = arith.constant 2.000000e+00 : f32
    %119 = math.sqrt %cst_55 : f32
    %cst_56 = arith.constant 1.000000e+00 : f32
    %120 = arith.divf %cst_56, %119 : f32
    %121 = vector.broadcast %120 : f32 to vector<32x256xf32>
    %122 = arith.mulf %116, %121 : vector<32x256xf32>
    %123 = math.erf %122 : vector<32x256xf32>
    %cst_57 = arith.constant 1.000000e+00 : f32
    %124 = vector.broadcast %cst_57 : f32 to vector<32x256xf32>
    %125 = arith.addf %124, %123 : vector<32x256xf32>
    %126 = arith.mulf %118, %125 : vector<32x256xf32>
    %127 = arith.truncf %126 : vector<32x256xf32> to vector<32x256xbf16>
    %c0_58 = arith.constant 0 : index
    %c0_59 = arith.constant 0 : index
    %c0_60 = arith.constant 0 : index
    %128 = vector.load %arg13[%c0_58, %c0_59, %c0_60] : memref<1x256x128xbf16, #tpu.memory_space<vmem>>, vector<1x256x128xbf16>
    %129 = vector.shape_cast %128 : vector<1x256x128xbf16> to vector<256x128xbf16>
    %cst_61 = arith.constant dense<0.000000e+00> : vector<32x128xf32>
    %130 = tpu.matmul %127, %129, %cst_61 {dimension_numbers = #tpu.dot_dimension_numbers<[1], [0], [0], [1], [0, 0, 1, 1], [], []>} : vector<32x256xbf16>, vector<256x128xbf16>, vector<32x128xf32> -> vector<32x128xf32>
    %c0_62 = arith.constant 0 : index
    %c0_63 = arith.constant 0 : index
    %c0_64 = arith.constant 0 : index
    %131 = vector.load %arg14[%c0_62, %c0_63, %c0_64] : memref<1x1x128xf32, #tpu.memory_space<vmem>>, vector<1x1x128xf32>
    %132 = vector.shape_cast %131 : vector<1x1x128xf32> to vector<1x128xf32>
    %133 = vector.broadcast %132 : vector<1x128xf32> to vector<32x128xf32>
    %134 = arith.addf %130, %133 : vector<32x128xf32>
    %135 = arith.addf %82, %134 : vector<32x128xf32>
    %136 = vector.shape_cast %135 : vector<32x128xf32> to vector<2x16x128xf32>
    %c0_65 = arith.constant 0 : index
    %c0_66 = arith.constant 0 : index
    %c0_67 = arith.constant 0 : index
    %137 = vector.load %arg15[%c0_65, %c0_66, %c0_67] : memref<2x16x128xf32, #tpu.memory_space<vmem>>, vector<2x16x128xf32>
    tpu.vector_store %arg15[%c0_65, %c0_66, %c0_67], %136 {strides = array<i32>} : memref<2x16x128xf32, #tpu.memory_space<vmem>>, vector<2x16x128xf32>,
    return
  }
  func.func @transform_0(%arg0: i32, %arg1: i32) -> (i32, i32, i32) {
    %c0_i32 = arith.constant 0 : i32
    %c0_i32_0 = arith.constant 0 : i32
    %c0_i32_1 = arith.constant 0 : i32
    return %arg0, %c0_i32, %c0_i32_0 : i32, i32, i32
  }
  func.func @transform_1(%arg0: i32, %arg1: i32) -> (i32, i32, i32) {
    %c0_i32 = arith.constant 0 : i32
    %c0_i32_0 = arith.constant 0 : i32
    %c0_i32_1 = arith.constant 0 : i32
    return %arg1, %c0_i32, %c0_i32_0 : i32, i32, i32
  }
  func.func @transform_2(%arg0: i32, %arg1: i32) -> (i32, i32, i32) {
    %c0_i32 = arith.constant 0 : i32
    %c0_i32_0 = arith.constant 0 : i32
    %c0_i32_1 = arith.constant 0 : i32
    return %arg1, %c0_i32, %c0_i32_0 : i32, i32, i32
  }
  func.func @transform_3(%arg0: i32, %arg1: i32) -> (i32, i32, i32) {
    %c0_i32 = arith.constant 0 : i32
    %c0_i32_0 = arith.constant 0 : i32
    %c0_i32_1 = arith.constant 0 : i32
    return %arg1, %c0_i32, %c0_i32_0 : i32, i32, i32
  }
  func.func @transform_4(%arg0: i32, %arg1: i32) -> (i32, i32, i32) {
    %c0_i32 = arith.constant 0 : i32
    %c0_i32_0 = arith.constant 0 : i32
    %c0_i32_1 = arith.constant 0 : i32
    return %arg1, %c0_i32, %c0_i32_0 : i32, i32, i32
  }
  func.func @transform_5(%arg0: i32, %arg1: i32) -> (i32, i32, i32, i32) {
    %c0_i32 = arith.constant 0 : i32
    %c0_i32_0 = arith.constant 0 : i32
    %c0_i32_1 = arith.constant 0 : i32
    %c0_i32_2 = arith.constant 0 : i32
    return %arg1, %c0_i32, %c0_i32_0, %c0_i32_1 : i32, i32, i32, i32
  }
  func.func @transform_6(%arg0: i32, %arg1: i32) -> (i32, i32, i32) {
    %c0_i32 = arith.constant 0 : i32
    %c0_i32_0 = arith.constant 0 : i32
    %c0_i32_1 = arith.constant 0 : i32
    return %arg1, %c0_i32, %c0_i32_0 : i32, i32, i32
  }
  func.func @transform_7(%arg0: i32, %arg1: i32) -> (i32, i32, i32) {
    %c0_i32 = arith.constant 0 : i32
    %c0_i32_0 = arith.constant 0 : i32
    %c0_i32_1 = arith.constant 0 : i32
    return %arg1, %c0_i32, %c0_i32_0 : i32, i32, i32
  }
  func.func @transform_8(%arg0: i32, %arg1: i32) -> (i32, i32, i32) {
    %c0_i32 = arith.constant 0 : i32
    %c0_i32_0 = arith.constant 0 : i32
    %c0_i32_1 = arith.constant 0 : i32
    return %arg1, %c0_i32, %c0_i32_0 : i32, i32, i32
  }
  func.func @transform_9(%arg0: i32, %arg1: i32) -> (i32, i32, i32) {
    %c0_i32 = arith.constant 0 : i32
    %c0_i32_0 = arith.constant 0 : i32
    %c0_i32_1 = arith.constant 0 : i32
    return %arg1, %c0_i32, %c0_i32_0 : i32, i32, i32
  }
  func.func @transform_10(%arg0: i32, %arg1: i32) -> (i32, i32, i32) {
    %c0_i32 = arith.constant 0 : i32
    %c0_i32_0 = arith.constant 0 : i32
    %c0_i32_1 = arith.constant 0 : i32
    return %arg1, %c0_i32, %c0_i32_0 : i32, i32, i32
  }
  func.func @transform_11(%arg0: i32, %arg1: i32) -> (i32, i32, i32) {
    %c0_i32 = arith.constant 0 : i32
    %c0_i32_0 = arith.constant 0 : i32
    %c0_i32_1 = arith.constant 0 : i32
    return %arg1, %c0_i32, %c0_i32_0 : i32, i32, i32
  }
  func.func @transform_12(%arg0: i32, %arg1: i32) -> (i32, i32, i32) {
    %c0_i32 = arith.constant 0 : i32
    %c0_i32_0 = arith.constant 0 : i32
    %c0_i32_1 = arith.constant 0 : i32
    return %arg1, %c0_i32, %c0_i32_0 : i32, i32, i32
  }
  func.func @transform_13(%arg0: i32, %arg1: i32) -> (i32, i32, i32) {
    %c0_i32 = arith.constant 0 : i32
    %c0_i32_0 = arith.constant 0 : i32
    %c0_i32_1 = arith.constant 0 : i32
    return %arg0, %c0_i32, %c0_i32_0 : i32, i32, i32
  }
}

</mosaic_0001>

<bundles_post_ra>
// kernel: tpu_custom_call.1
= control target key start
LH: loop header
LB: loop body
LE: loop exit
PB: predicated region body
PF: predicated region fallthrough
CT: control target
= control target key end

     0   :  { %s4403_s0 = inlined_call_operand.hbm [shape: f32[4,16,128], index: 0, kind: input, shape index: {}]   ;;  %s4404_s1 = inlined_call_operand.hbm [shape: f32[2,1,128], index: 1, kind: input, shape index: {}]   ;;  %s4405_s2 = inlined_call_operand.hbm [shape: f32[2,1,128], index: 2, kind: input, shape index: {}]   ;;  %s4406_s3 = inlined_call_operand.hbm [shape: bf16[2,128,384], index: 3, kind: input, shape index: {}]   ;;  %s4407_s4 = inlined_call_operand.vmem [shape: f32[2,1,384], index: 4, kind: input, shape index: {}]   ;;  %s4408_s5 = inlined_call_operand.hbm [shape: bf16[2,2,64,128], index: 5, kind: input, shape index: {}]   ;;  %s4409_s6 = inlined_call_operand.hbm [shape: f32[2,1,128], index: 6, kind: input, shape index: {}]   ;;  %s4410_s7 = inlined_call_operand.vmem [shape: f32[2,1,128], index: 7, kind: input, shape index: {}]   ;;  %s4411_s8 = inlined_call_operand.vmem [shape: f32[2,1,128], index: 8, kind: input, shape index: {}]   ;;  %s4412_s9 = inlined_call_operand.hbm [shape: bf16[2,128,256], index: 9, kind: input, shape index: {}]   ;;  %s4413_s10 = inlined_call_operand.vmem [shape: f32[2,1,256], index: 10, kind: input, shape index: {}]   ;;  %s4414_s11 = inlined_call_operand.hbm [shape: bf16[2,256,128], index: 11, kind: input, shape index: {}]   ;;  %s4415_s12 = inlined_call_operand.vmem [shape: f32[2,1,128], index: 12, kind: input, shape index: {}]   ;;  %s4416_s13 = inlined_call_operand.hbm [shape: f32[4,16,128], index: 13, kind: output, shape index: {}]  }
   0x1   :  { %4445 = sst [smem:[#allocation39_spill]] %s4403_s0 }
   0x2   :  { %4446 = sst [smem:[#allocation40_spill]] %s4404_s1 }
   0x3   :  { %4447 = sst [smem:[#allocation41_spill]] %s4405_s2 }
   0x4   :  { %4448 = sst [smem:[#allocation42_spill]] %s4406_s3 }
   0x5   :  { %4449 = sst [smem:[#allocation43_spill]] %s4407_s4 }
   0x6   :  { %4450 = sst [smem:[#allocation44_spill]] %s4408_s5 }
   0x7   :  { %4451 = sst [smem:[#allocation45_spill]] %s4409_s6 }
   0x8   :  { %4452 = sst [smem:[#allocation46_spill]] %s4410_s7 }
   0x9   :  { %4453 = sst [smem:[#allocation47_spill]] %s4411_s8 }
   0xa   :  { %4454 = sst [smem:[#allocation48_spill]] %s4412_s9 }
   0xb   :  { %4455 = sst [smem:[#allocation49_spill]] %s4413_s10 }
   0xc   :  { %4456 = sst [smem:[#allocation50_spill]] %s4414_s11 }
   0xd   :  { %4457 = sst [smem:[#allocation51_spill]] %s4415_s12 }
   0xe   :  { %4458 = sst [smem:[#allocation52_spill]] %s4416_s13 }
   0xf   :  { %18 = vsyncpa [#allocation3], 0 }
  0x10   :  { %20 = vsyncpa [#allocation3 + $0x1], 0 }
  0x11   :  { %21 = vsyncpa [#allocation6], 0 }
  0x12   :  { %23 = vsyncpa [#allocation6 + $0x1], 0 }
  0x13   :  { %24 = vsyncpa [#allocation9], 0 }
  0x14   :  { %26 = vsyncpa [#allocation9 + $0x1], 0 }
  0x15   :  { %27 = vsyncpa [#allocation12], 0 }
  0x16   :  { %29 = vsyncpa [#allocation12 + $0x1], 0 }
  0x17   :  { %30 = vsyncpa [#allocation15], 0 }
  0x18   :  { %32 = vsyncpa [#allocation15 + $0x1], 0 }
  0x19   :  { %33 = vsyncpa [#allocation4], 0 }
  0x1a   :  { %35 = vsyncpa [#allocation4 + $0x1], 0  ;;  %s3712_s25 = smov 0   ;;  %s3714_s26 = smov 0  }
  0x1b   :  { %s3716_s27 = smov 0   ;;  %s3718_s28 = smov 0  }
  0x1c   :  { %s3720_s29 = smov 0   ;;  %s3722_s30 = smov 0  }
  0x1d   :  { %s3724_s14 = smov 0   ;;  %s3726_s15 = smov 0  }
  0x1e   :  { %s3728_s16 = smov 0   ;;  %s3730_s17 = smov 0  }
  0x1f   :  { %s3732_s18 = smov 0  }
  0x20 LB: > { %4459 = sst [smem:[#allocation23_spill]] %s3583_s26  ;;  %p68_p0 = scmp.eq.s32.totalorder %s3619_s18, 0  ;;  %s3619_s18 = sphi %s3732_s18, %s41_s18   ;;  %s3615_s17 = sphi %s3730_s17, %s4534_s17   ;;  %s3611_s16 = sphi %s3728_s16, %s4533_s16   ;;  %s3607_s15 = sphi %s3726_s15, %s4532_s15   ;;  %s3603_s14 = sphi %s3724_s14, %s4531_s14   ;;  %s3599_s30 = sphi %s3722_s30, %s4530_s30   ;;  %s3595_s29 = sphi %s3720_s29, %s4529_s29   ;;  %s3591_s28 = sphi %s3718_s28, %s4528_s28   ;;  %s3587_s27 = sphi %s3716_s27, %s4527_s27   ;;  %s3583_s26 = sphi %s3714_s26, %s4526_s26   ;;  %s3579_s25 = sphi %s3712_s25, %s4525_s25  }
  0x21   : > { %4460 = sst [smem:[#allocation24_spill]] %s3587_s27  ;;  %p93_p1 = scmp.ne.s32.totalorder %s3587_s27, %s3583_s26 }
  0x22   : > { %4461 = sst [smem:[#allocation25_spill]] %s3591_s28  ;;  %p99_p2 = scmp.ne.s32.totalorder %s3583_s26, %s3579_s25 }
  0x23   : > { %4462 = sst [smem:[#allocation26_spill]] %s3595_s29  ;;  %p4421_p3 = scmp.lt.s32.totalorder %s3619_s18, 4 }
  0x24   : > { %4463 = sst [smem:[#allocation27_spill]] %s3599_s30  ;;  %p95_p4 = por %p93_p1, %p68_p0 }
  0x25   : > { %4464 = sst [smem:[#allocation28_spill]] %s3603_s14  ;;  %s3777_s20 = sand.u32 1, %s3619_s18  }
  0x26   : > { %4465 = sst [smem:[#allocation29_spill]] %s3607_s15  ;;  %s3780_s21 = sand.u32 1, %s3587_s27  }
  0x27   : > { %4466 = sst [smem:[#allocation30_spill]] %s3611_s16  ;;  %s3783_s22 = sshll.u32 %s3611_s16, 4 }
  0x28   : > { %4467 = sst [smem:[#allocation31_spill]] %s3615_s17  ;;  %s460_s15 = scalar_lea.vmem [#allocation5], %s3780_s21 }
  0x29   : > { %4468 = sst [smem:[#allocation32_spill]] %s3619_s18  ;;  %s467_s19 = sshll.u32 %s460_s15, 4  ;;  %s468_s19 = int_to_ptr.vmem [resolvable:$true] %s467_s19 }
  0x2a   : > { %s4469_s1 = sld [smem:[#allocation40_spill]]  ;;  %p3792_p5 = pnand %p4421_p3, %p95_p4 }
  0x2b   : > { %p2659_p6 = scmp.ge.s32.totalorder %s3619_s18, 1  ;;  %p622_p7 = scmp.lt.s32.totalorder %s3619_s18, 5 }
  0x2c   : > { %s4419_s10 = scalar_lea.sflag [#allocation6], %s3777_s20  ;;  %p3801_p8 = pneg %p3792_p5 }
  0x2d   : > { %s3272_s23 = scalar_lea.vmem %s468_s19, 16  ;;  %s3621_s15 = smov [#allocation5]  }
  0x2e   : > { %p3273_p9 = scmp.ne.s32.totalorder %s468_s19, %s3272_s23  ;;  %s3277_s24 = sshll.u32 %s3621_s15, 4  ;;  %s3278_s24 = int_to_ptr.vmem [resolvable:$false] %s3277_s24 }
  0x2f   : > { %p3280_p12 = scmp.lt.s32.totalorder %s468_s19, %s3278_s24 }
  0x30   : > { %s465_s13 = scalar_lea.hbm %s4469_s1, %s3783_s22  ;;  %p3275_p10 = pnand %p3273_p9, %p3801_p8 }
  0x31   : > { %s3279_s1 = scalar_lea.vmem %s3278_s24, 32 }
  0x32   : > { %p3276_p11 = pneg %p3275_p10  ;;  %p3281_p13 = scmp.lt.s32.totalorder %s3279_s1, %s3272_s23 }
  0x34   : > { %p3282_p1 = por %p3281_p13, %p3280_p12 }
  0x36   : > { %p3283_p4 = pnand %p3282_p1, %p3276_p11 }
  0x38   : > { %3286 = shalt.err (!%p3283_p4)
}
  0x39   : > { %2956 = dma.hbm_to_vmem [thread:$0]  (!%p3792_p5), %s465_s13, 16, %s468_s19, %s4419_s10  }
  0x3a   : > { %p3815_p9 = pnand %p2659_p6, %p622_p7  ;;  %s2928_s1 = smul.u32 192, %s3780_s21 }
  0x3b   : > { %s2929_s23 = smul.u32 3072, %s3611_s16  ;;  %s4474_s3 = sld [smem:[#allocation42_spill]] }
  0x3c   : > { %s4472_s15 = scalar_select %p3815_p9, 1, 0 }
  0x3d   : > { %s495_s14 = scalar_lea.vmem [#allocation8], %s2928_s1  ;;  %s4425_s9 = scalar_lea.sflag [#allocation9], %s3777_s20 }
  0x3e   : > { %4473 = sst [smem:[#allocation33_spill]] %s4472_s15  ;;  %s502_s11 = sshll.u32 %s495_s14, 4  ;;  %s503_s11 = int_to_ptr.vmem [resolvable:$true] %s502_s11 }
  0x3f   : > { %s3300_s5 = scalar_lea.vmem %s503_s11, 3072  ;;  %s3622_s13 = smov [#allocation8]  }
  0x40   : > { %p3301_p10 = scmp.ne.s32.totalorder %s503_s11, %s3300_s5  ;;  %s3305_s19 = sshll.u32 %s3622_s13, 4  ;;  %s3306_s19 = int_to_ptr.vmem [resolvable:$false] %s3305_s19 }
  0x41   : > { %s501_s7 = scalar_lea.hbm %s4474_s3, %s2929_s23  ;;  %s3307_s10 = scalar_lea.vmem %s3306_s19, 6144 }
  0x42   : > { %p3303_p11 = pnand %p3301_p10, %p3801_p8  ;;  %p3308_p6 = scmp.lt.s32.totalorder %s503_s11, %s3306_s19 }
  0x43   : > { %p3309_p7 = scmp.lt.s32.totalorder %s3307_s10, %s3300_s5 }
  0x44   : > { %p3304_p12 = pneg %p3303_p11 }
  0x45   : > { %p3310_p13 = por %p3309_p7, %p3308_p6 }
  0x47   : > { %p3311_p1 = pnand %p3310_p13, %p3304_p12 }
  0x49   : > { %3314 = shalt.err (!%p3311_p1)
}
  0x4a   : > { %s3623_s8 = smov 192   ;;  %s3624_s14 = smov 12  }
  0x4b   : > { %2962 = dma.hbm_to_vmem [thread:$0]  (!%p3792_p5), %s501_s7, 3072, %s503_s11, %s4425_s9, %s3623_s8, %s3623_s8, %s3624_s14  }
  0x4c   : > { %s4475_s6 = sld [smem:[#allocation45_spill]]  ;;  %s543_s13 = scalar_lea.vmem [#allocation11], %s3780_s21 }
  0x4d   : > { %s550_s5 = sshll.u32 %s543_s13, 4  ;;  %s4423_s10 = scalar_lea.sflag [#allocation12], %s3777_s20  ;;  %s551_s5 = int_to_ptr.vmem [resolvable:$true] %s550_s5 }
  0x4e   : > { %s3328_s19 = scalar_lea.vmem %s551_s5, 16  ;;  %s3625_s3 = smov [#allocation11]  }
  0x4f   : > { %p3329_p4 = scmp.ne.s32.totalorder %s551_s5, %s3328_s19  ;;  %s3333_s15 = sshll.u32 %s3625_s3, 4  ;;  %s3334_s15 = int_to_ptr.vmem [resolvable:$false] %s3333_s15 }
  0x50   : > { %s3335_s2 = scalar_lea.vmem %s3334_s15, 32  ;;  %p3336_p12 = scmp.lt.s32.totalorder %s551_s5, %s3334_s15 }
  0x51   : > { %p3331_p10 = pnand %p3329_p4, %p3801_p8  ;;  %p3337_p6 = scmp.lt.s32.totalorder %s3335_s2, %s3328_s19 }
  0x52   : > { %s548_s24 = scalar_lea.hbm %s4475_s6, %s3783_s22 }
  0x53   : > { %p3332_p11 = pneg %p3331_p10  ;;  %p3338_p7 = por %p3337_p6, %p3336_p12 }
  0x55   : > { %p3339_p13 = pnand %p3338_p7, %p3332_p11 }
  0x57   : > { %3342 = shalt.err (!%p3339_p13)
}
  0x58   : > { %2968 = dma.hbm_to_vmem [thread:$0]  (!%p3792_p5), %s548_s24, 16, %s551_s5, %s4423_s10  }
  0x59   : > { %s3844_s2 = sadd.s32 4294967295, %s3619_s18   ;;  %s2639_s3 = sadd.s32 4294967294, %s3619_s18  }
  0x5a   : > { %s50_s7 = sadd.s32 1, %s3611_s16  ;;  %s53_s11 = sadd.s32 1, %s3615_s17 }
  0x5b   : > { %p51_p1 = scmp.ge.s32.totalorder %s50_s7, 2  ;;  %s60_s15 = sadd.s32 1, %s3599_s30 }
  0x5c   : > { %p67_p4 = scmp.ne.s32.totalorder %s3599_s30, %s3595_s29  ;;  %p4422_p10 = scmp.ne.s32.totalorder %s3595_s29, %s3591_s28 }
  0x5d   : > { %s4536_s7 = smov (%p51_p1, %s50_s7), 0  ;;  %s4538_s11 = smov (!%p51_p1, %s53_s11), %s3615_s17 }
  0x5e   : > { %4476 = sst [smem:[#allocation34_spill]] %s4536_s7  ;;  %p3862_p11 = por %p68_p0, %p67_p4 }
  0x5f   : > { %p74_p12 = scmp.eq.s32.totalorder %s3844_s2, 0  ;;  %p55_p6 = scmp.ge.s32.totalorder %s4538_s11, 2 }
  0x60   : > { %s83_s14 = ssub.s32 %s3611_s16, %s4536_s7  ;;  %s4480_s23 = sadd.s32 1, %s3587_s27 }
  0x61   : > { %p3872_p7 = por %p74_p12, %p4422_p10  ;;  %p84_p13 = scmp.eq.s32.totalorder %s83_s14, 0 }
  0x62   : > { %s4540_s11 = smov (%p55_p6, %s4538_s11), 0  ;;  %p3888_p0 = por %p99_p2, %p74_p12 }
  0x63   : > { %s4478_s1 = scalar_select %p3872_p7, 1, 0 }
  0x64   : > { %4479 = sst [smem:[#allocation35_spill]] %s4540_s11  ;;  %s57_s13 = ssub.s32 %s3615_s17, %s4540_s11 }
  0x65   : > { %s3881_s24 = scalar_select %p84_p13, %s3587_s27, %s4480_s23  }
  0x66   : > { %s4482_s5 = scalar_select %p3888_p0, 1, 0 }
  0x67   : > { %4481 = sst [smem:[#allocation36_spill]] %s3881_s24  ;;  %p58_p1 = scmp.eq.s32.totalorder %s57_s13, 0 }
  0x68   : > { %p409_p3 = scmp.eq.s32.totalorder %s3844_s2, 3  ;;  %p415_p10 = scmp.eq.s32.totalorder %s2639_s3, 3 }
  0x69   : > { %s435_s19 = sand.u32 1, %s3599_s30   ;;  %p4485_p13 = scmp.ne.s32.totalorder %s3595_s29, %s3591_s28 }
  0x6a   : > { %s3895_s10 = scalar_select %p58_p1, %s3599_s30, %s60_s15  }
  0x6b   : > { %p3900_p6 = por %p409_p3, %p67_p4  ;;  %p3907_p7 = por %p415_p10, %p4485_p13 }
  0x6c   : > { %4483 = sst [smem:[#allocation37_spill]] %s3895_s10  ;;  %s2642_s25 = sshll.u32 %s435_s19, 5 }
  0x6d   : > { %s4484_s14 = scalar_select %p3900_p6, 1, 0 }
  0x6e   : > { %s4486_s23 = scalar_select %p3907_p7, 1, 0 }
  0x6f   : > { %s2764_s9 = sshll.u32 %s3615_s17, 9  ;;  %s4488_s0 = sld [smem:[#allocation39_spill]] }
  0x70   : > { %4487 = sst [smem:[#allocation38_spill]] %s4486_s23  ;;  %s439_s3 = scalar_lea.vmem [#allocation2], %s2642_s25 }
  0x71   : > { %s447_s7 = sshll.u32 %s439_s3, 4  ;;  %p4489_p2 = scmp.lt.s32.totalorder %s3619_s18, 4  ;;  %s448_s7 = int_to_ptr.vmem [resolvable:$true] %s447_s7 }
  0x72   : > { %s436_s10 = scalar_lea.sflag [#allocation3], %s435_s19  ;;  %s3356_s30 = scalar_lea.vmem %s448_s7, 512 }
  0x73   : > { %p3919_p3 = pnand %p4489_p2, %p3862_p11  ;;  %p3357_p10 = scmp.ne.s32.totalorder %s448_s7, %s3356_s30 }
  0x74   : > { %s3626_s17 = smov [#allocation2]  }
  0x75   : > { %s446_s13 = scalar_lea.hbm %s4488_s0, %s2764_s9  ;;  %p3345_p4 = pneg %p3919_p3 }
  0x76   : > { %s3361_s6 = sshll.u32 %s3626_s17, 4  ;;  %s3362_s6 = int_to_ptr.vmem [resolvable:$false] %s3361_s6 }
  0x77   : > { %p3359_p12 = pnand %p3357_p10, %p3345_p4  ;;  %s3363_s9 = scalar_lea.vmem %s3362_s6, 1024 }
  0x78   : > { %p3364_p13 = scmp.lt.s32.totalorder %s448_s7, %s3362_s6  ;;  %p3365_p7 = scmp.lt.s32.totalorder %s3363_s9, %s3356_s30 }
  0x79   : > { %p3360_p1 = pneg %p3359_p12 }
  0x7a   : > { %p3366_p6 = por %p3365_p7, %p3364_p13 }
  0x7c   : > { %p3367_p0 = pnand %p3366_p6, %p3360_p1 }
  0x7e   : > { %3370 = shalt.err (!%p3367_p0)
}
  0x7f   : > { %s4433_s11 = smov 128   ;;  %s4434_s8 = smov 8  }
  0x80   : > { %2953 = dma.hbm_to_vmem [thread:$0]  (!%p3919_p3), %s446_s13, 512, %s448_s7, %s436_s10, %s4433_s11, %s4433_s11, %s4434_s8  }
  0x81   : > { %s4491_s25 = sld [smem:[#allocation41_spill]]  ;;  %s477_s30 = scalar_lea.vmem [#allocation7], %s3780_s21 }
  0x82   : > { %s484_s6 = sshll.u32 %s477_s30, 4  ;;  %s2649_s9 = sshll.u32 %s3780_s21, 6  ;;  %s485_s6 = int_to_ptr.vmem [resolvable:$true] %s484_s6 }
  0x83   : > { %s3384_s0 = scalar_lea.vmem %s485_s6, 16  ;;  %s3629_s24 = smov [#allocation7]  }
  0x84   : > { %p3385_p11 = scmp.ne.s32.totalorder %s485_s6, %s3384_s0  ;;  %s3389_s27 = sshll.u32 %s3629_s24, 4  ;;  %s3390_s27 = int_to_ptr.vmem [resolvable:$false] %s3389_s27 }
  0x85   : > { %s3391_s15 = scalar_lea.vmem %s3390_s27, 32  ;;  %p3392_p6 = scmp.lt.s32.totalorder %s485_s6, %s3390_s27 }
  0x86   : > { %p3387_p7 = pnand %p3385_p11, %p3801_p8  ;;  %p3393_p2 = scmp.lt.s32.totalorder %s3391_s15, %s3384_s0 }
  0x87   : > { %s482_s3 = scalar_lea.hbm %s4491_s25, %s3783_s22 }
  0x88   : > { %p3388_p0 = pneg %p3387_p7  ;;  %p3394_p3 = por %p3393_p2, %p3392_p6 }
  0x8a   : > { %p3395_p4 = pnand %p3394_p3, %p3388_p0 }
  0x8c   : > { %3398 = shalt.err (!%p3395_p4)
}
  0x8d   : > { %s4492_s22 = scalar_lea.sflag [#allocation6], %s3777_s20  ;;  %s2765_s10 = sshll.u32 %s3611_s16, 10 }
  0x8e   : > { %2959 = dma.hbm_to_vmem [thread:$0]  (!%p3792_p5), %s482_s3, 16, %s485_s6, %s4492_s22  }
  0x8f   : > { %s4493_s17 = sld [smem:[#allocation44_spill]]  ;;  %s523_s19 = scalar_lea.vmem [#allocation10], %s2649_s9 }
  0x90   : > { %s530_s25 = sshll.u32 %s523_s19, 4  ;;  %s2653_s0 = sshll.u32 %s3780_s21, 7  ;;  %s531_s25 = int_to_ptr.vmem [resolvable:$true] %s530_s25 }
  0x91   : > { %s3412_s27 = scalar_lea.vmem %s531_s25, 1024  ;;  %s3630_s30 = smov [#allocation10]  }
  0x92   : > { %p3413_p10 = scmp.ne.s32.totalorder %s531_s25, %s3412_s27  ;;  %s3417_s15 = sshll.u32 %s3630_s30, 4  ;;  %s3418_s15 = int_to_ptr.vmem [resolvable:$false] %s3417_s15 }
  0x93   : > { %s3419_s11 = scalar_lea.vmem %s3418_s15, 2048  ;;  %p3420_p13 = scmp.lt.s32.totalorder %s531_s25, %s3418_s15 }
  0x94   : > { %p3415_p12 = pnand %p3413_p10, %p3801_p8  ;;  %p3421_p11 = scmp.lt.s32.totalorder %s3419_s11, %s3412_s27 }
  0x95   : > { %s529_s24 = scalar_lea.hbm %s4493_s17, %s2765_s10 }
  0x96   : > { %p3416_p1 = pneg %p3415_p12  ;;  %p3422_p7 = por %p3421_p11, %p3420_p13 }
  0x98   : > { %p3423_p0 = pnand %p3422_p7, %p3416_p1 }
  0x9a   : > { %3426 = shalt.err (!%p3423_p0)
}
  0x9b   : > { %s4435_s3 = smov 64   ;;  %s4436_s6 = smov 4  }
  0x9c   : > { %s4494_s9 = scalar_lea.sflag [#allocation9], %s3777_s20  ;;  %s2766_s22 = sshll.u32 %s3611_s16, 11 }
  0x9d   : > { %2965 = dma.hbm_to_vmem [thread:$0]  (!%p3792_p5), %s529_s24, 1024, %s531_s25, %s4494_s9, %s4435_s3, %s4435_s3, %s4436_s6  }
  0x9e   : > { %s4495_s11 = sld [smem:[#allocation48_spill]]  ;;  %s573_s17 = scalar_lea.vmem [#allocation13], %s2653_s0 }
  0x9f   : > { %s580_s19 = sshll.u32 %s573_s17, 4  ;;  %s3633_s30 = smov [#allocation13]   ;;  %s581_s19 = int_to_ptr.vmem [resolvable:$true] %s580_s19 }
  0xa0   : > { %s3440_s27 = scalar_lea.vmem %s581_s19, 2048  ;;  %s3445_s15 = sshll.u32 %s3633_s30, 4  ;;  %s3446_s15 = int_to_ptr.vmem [resolvable:$false] %s3445_s15 }
  0xa1   : > { %p3441_p6 = scmp.ne.s32.totalorder %s581_s19, %s3440_s27  ;;  %s3447_s8 = scalar_lea.vmem %s3446_s15, 4096 }
  0xa2   : > { %p3448_p4 = scmp.lt.s32.totalorder %s581_s19, %s3446_s15  ;;  %p3449_p10 = scmp.lt.s32.totalorder %s3447_s8, %s3440_s27 }
  0xa3   : > { %p3443_p2 = pnand %p3441_p6, %p3801_p8 }
  0xa4   : > { %s579_s13 = scalar_lea.hbm %s4495_s11, %s2766_s22  ;;  %p3450_p12 = por %p3449_p10, %p3448_p4 }
  0xa5   : > { %p3444_p3 = pneg %p3443_p2 }
  0xa7   : > { %p3451_p1 = pnand %p3450_p12, %p3444_p3 }
  0xa9   : > { %3454 = shalt.err (!%p3451_p1)
}
  0xaa   : > { %s4496_s24 = smov 8   ;;  %s4497_s25 = smov 128  }
  0xab   : > { %s4498_s9 = scalar_lea.sflag [#allocation12], %s3777_s20  ;;  %s4499_s11 = sld [smem:[#allocation50_spill]] }
  0xac   : > { %2971 = dma.hbm_to_vmem [thread:$0]  (!%p3792_p5), %s579_s13, 2048, %s581_s19, %s4498_s9, %s4497_s25, %s4497_s25, %s4496_s24  }
  0xad   : > { %s601_s8 = scalar_lea.vmem [#allocation14], %s2653_s0  ;;  %s598_s30 = scalar_lea.sflag [#allocation15], %s3780_s21 }
  0xae   : > { %s608_s27 = sshll.u32 %s601_s8, 4  ;;  %s3634_s3 = smov [#allocation14]   ;;  %s609_s27 = int_to_ptr.vmem [resolvable:$true] %s608_s27 }
  0xaf   : > { %s3468_s15 = scalar_lea.vmem %s609_s27, 2048  ;;  %s3473_s20 = sshll.u32 %s3634_s3, 4  ;;  %s3474_s20 = int_to_ptr.vmem [resolvable:$false] %s3473_s20 }
  0xb0   : > { %p3469_p13 = scmp.ne.s32.totalorder %s609_s27, %s3468_s15  ;;  %s3475_s6 = scalar_lea.vmem %s3474_s20, 4096 }
  0xb1   : > { %s607_s17 = scalar_lea.hbm %s4499_s11, %s2766_s22  ;;  %p3476_p0 = scmp.lt.s32.totalorder %s609_s27, %s3474_s20 }
  0xb2   : > { %p3471_p11 = pnand %p3469_p13, %p3801_p8  ;;  %p3477_p6 = scmp.lt.s32.totalorder %s3475_s6, %s3468_s15 }
  0xb4   : > { %p3472_p7 = pneg %p3471_p11  ;;  %p3478_p2 = por %p3477_p6, %p3476_p0 }
  0xb6   : > { %p3479_p3 = pnand %p3478_p2, %p3472_p7 }
  0xb8   : > { %3482 = shalt.err (!%p3479_p3)
}
  0xb9   : > { %s4500_s0 = smov 4   ;;  %s4501_s22 = smov 64  }
  0xba   : > { %2974 = dma.hbm_to_vmem [thread:$0]  (!%p3792_p5), %s607_s17, 2048, %s609_s27, %s598_s30, %s4501_s22, %s4501_s22, %s4500_s0  }
  0xbb   : > { %626 = sbr.rel (%p3815_p9) target bundleno = 2555 (0x9fb), region = 72  ;;  %s3987_s4 = sand.u32 (!%p3815_p9), 1, %s3595_s29  }
  0xbc   : > { %s4437_s3 = sshll.u32 (!%p3815_p9), %s3987_s4, 5  ;;  %s629_s6 = scalar_lea.sflag (!%p3815_p9), [#allocation3], %s3987_s4 }
  0xbd   : > { %s3993_s13 = scalar_lea.vmem (!%p3815_p9), [#allocation2], %s4437_s3  ;;  %p4503_p8 = scmp.ne.s32.totalorder (!%p3815_p9), %s4478_s1, 0 }
  0xc0   : > { %3554 = dma.done.wait (%p4503_p8), %s629_s6, 512  }
  0xc1   : > { %3556 = vsyncadd (%p4503_p8), %s629_s6, 4294966784  ;;  %s637_s12 = sand.u32 1, %s3844_s2   ;;  %s4001_s19 = sand.u32 1, %s3583_s26  }
  0xc2   : > { %s638_s24 = scalar_lea.sflag [#allocation6], %s637_s12  ;;  %p4504_p5 = scmp.ne.s32.totalorder %s4482_s5, 0 }
  0xc4   : > { %3558 = dma.done.wait (%p4504_p5), %s638_s24, 32  }
  0xc5   : > { %3560 = vsyncadd (%p4504_p5), %s638_s24, 4294967264  ;;  %s2930_s9 = smul.u32 192, %s4001_s19  ;;  %s654_s10 = scalar_lea.sflag [#allocation9], %s637_s12 }
  0xc7   : > { %s4010_s7 = scalar_lea.vmem [#allocation8], %s2930_s9 }
  0xc8   : > { %3562 = dma.done.wait (%p4504_p5), %s654_s10, 4096  }
  0xc9   : > { %3564 = vsyncadd (%p4504_p5), %s654_s10, 4294963200  ;;  %s2661_s2 = sshll.u32 %s4001_s19, 6  ;;  %s672_s17 = scalar_lea.sflag [#allocation12], %s637_s12 }
  0xca   : > { %s4017_s11 = scalar_lea.vmem [#allocation10], %s2661_s2 }
  0xcb   : > { %3566 = dma.done.wait (%p4504_p5), %s672_s17, 2064  }
  0xcc   : > { %3568 = vsyncadd (%p4504_p5), %s672_s17, 4294965232  ;;  %s2662_s27 = sshll.u32 %s4001_s19, 7  ;;  %s689_s15 = scalar_lea.sflag [#allocation15], %s4001_s19 }
  0xcd   : > { %s4025_s30 = scalar_lea.vmem [#allocation13], %s2662_s27  ;;  %s4028_s20 = scalar_lea.vmem [#allocation14], %s2662_s27 }
  0xce   : > { %3570 = dma.done.wait (%p4504_p5), %s689_s15, 2048  }
  0xcf   : > { %3572 = vsyncadd (%p4504_p5), %s689_s15, 4294965248  ;;  %s4505_s0 = sld [smem:[#allocation28_spill]]  ;;  %s4511_s12 = sshll.u32 %s3987_s4, 5 }
  0xd0   : > { %s4506_s24 = sld [smem:[#allocation46_spill]] }
  0xd1   : > { %s4507_s5 = sld [smem:[#allocation47_spill]] }
  0xd2   : > { %s4508_s1 = sld [smem:[#allocation43_spill]] }
  0xd3   : > { %s4509_s29 = sld [smem:[#allocation49_spill]] }
  0xd4   : > { %s4510_s18 = sld [smem:[#allocation51_spill]] }
  0xd5   : > { %p785_p9 = scmp.lt.s32.totalorder %s4505_s0, 1  ;;  %p2666_p4 = scmp.ne.s32.totalorder %s4505_s0, 0 }
  0xd7   : > { %s4036_s22 = scalar_select %p785_p9, %s4505_s0, 1 }
  0xd8   : > { %807 = sbr.rel (%p2666_p4) target bundleno = 224 (0xe0), region = 108 }
  0xd9   : > { %s2931_s21 = smul.u32 3, %s4036_s22  ;;  %s791_s9 = scalar_lea.vmem %s4506_s24, %s4036_s22 }
  0xda   : > { %s794_s17 = scalar_lea.vmem %s4507_s5, %s4036_s22  ;;  %s2665_s27 = sshll.u32 %s4036_s22, 1 }
  0xdb   : > { %s4051_s25 = scalar_lea.vmem %s4508_s1, %s2931_s21  ;;  %s4056_s26 = scalar_lea.vmem %s4509_s29, %s2665_s27 }
  0xdc   : > { %s801_s6 = scalar_lea.vmem %s4510_s18, %s4036_s22  ;;  %s4064_s24 = scalar_lea.vmem [#allocation16], %s4511_s12 }
  0xdd   : > { %v808_v0 = vld [vmem:[%s3993_s13] sm:$0xff]  ;;  %v809_v1 = vld [vmem:[%s3993_s13 + $0x8] sm:$0xff]  ;;  %v810_v2 = vld [vmem:[%s3993_s13 + $0x10] sm:$0xff] }
  0xde   : > { %812 = vst [vmem:[%s4064_s24] sm:$0xff] %v808_v0  ;;  %813 = vst [vmem:[%s4064_s24 + $0x8] sm:$0xff] %v809_v1  ;;  %v811_v3 = vld [vmem:[%s3993_s13 + $0x18] sm:$0xff] }
  0xdf   : > { %814 = vst [vmem:[%s4064_s24 + $0x10] sm:$0xff] %v810_v2  ;;  %815 = vst [vmem:[%s4064_s24 + $0x18] sm:$0xff] %v811_v3 }
  0xe0 PF: > { %v3111_v8 = vld [vmem:[%s4010_s7 + $0xac] ss:$12 sps:$4 sm:$0xff]   ;;  %v3113_v9 = vld [vmem:[%s4010_s7 + $0xa8] ss:$12 sps:$4 sm:$0xff]   ;;  %v3116_v27 = vld [vmem:[%s4010_s7 + $0xb0] ss:$12 sps:$4 sm:$0xff]  }
  0xe1   : > { %1066 = vmatprep.subr.bf16.mxu0 %v3111_v8  ;;  %v3114_v26 = vld [vmem:[%s4010_s7 + $0x94] ss:$12 sps:$4 sm:$0xff]   ;;  %v3117_v28 = vld [vmem:[%s4010_s7 + $0x90] ss:$12 sps:$4 sm:$0xff]   ;;  %2836 = vmatprep.subr.bf16.mxu1 %v3116_v27  ;;  %v3120_v30 = vld [vmem:[%s4010_s7 + $0x98] ss:$12 sps:$4 sm:$0xff]  }
  0xe2   : > { %1067 = vmatpush1.bf16.msra.mxu0 %v3113_v9  ;;  %2837 = vmatpush3.bf16.msra.mxu1 %v3116_v27  ;;  %v3118_v29 = vld [vmem:[%s4010_s7 + $0x7c] ss:$12 sps:$4 sm:$0xff]   ;;  %v3121_v31 = vld [vmem:[%s4010_s7 + $0x78] ss:$12 sps:$4 sm:$0xff]   ;;  %v3124_v33 = vld [vmem:[%s4010_s7 + $0x80] ss:$12 sps:$4 sm:$0xff]  }
  0xe3   : > { %1068 = vmatprep.subr.bf16.mxu0 %v3114_v26  ;;  %2838 = vmatprep.subr.bf16.mxu1 %v3120_v30  ;;  %v3122_v32 = vld [vmem:[%s4010_s7 + $0x64] ss:$12 sps:$4 sm:$0xff]   ;;  %v3125_v34 = vld [vmem:[%s4010_s7 + $0x60] ss:$12 sps:$4 sm:$0xff]   ;;  %v3128_v36 = vld [vmem:[%s4010_s7 + $0x68] ss:$12 sps:$4 sm:$0xff]  }
  0xe4   : > { %v3126_v35 = vld [vmem:[%s4010_s7 + $0x4c] ss:$12 sps:$4 sm:$0xff]   ;;  %v3129_v37 = vld [vmem:[%s4010_s7 + $0x48] ss:$12 sps:$4 sm:$0xff]   ;;  %v3132_v39 = vld [vmem:[%s4010_s7 + $0x50] ss:$12 sps:$4 sm:$0xff]  }
  0xe5   : > { %v816_v4 = vld [vmem:[%s4064_s24] sm:$0xff]  ;;  %v817_v6 = vld [vmem:[%s4064_s24 + $0x8] sm:$0xff]  ;;  %v3635_v43 = vmov 0   ;;  %s4512_s28 = scalar_lea.vmem [#allocation5], %s4001_s19  ;;  %s4513_s29 = scalar_lea.vmem [#allocation7], %s4001_s19  ;;  %vm3637_vm0 = vmmov 0  }
  0xe6   : > { %v818_v5 = vld [vmem:[%s4064_s24 + $0x10] sm:$0xff]  ;;  %822 = vadd.xlane.f32.xlu0 %v816_v4  ;;  %v819_v7 = vld [vmem:[%s4064_s24 + $0x18] sm:$0xff]  ;;  %1069 = vmatpush1.bf16.msra.mxu0 %v3117_v28  ;;  %vm1228_vm1 = vcmask 523264   ;;  %s3638_s16 = smov 64   ;;  %vm1417_vm2 = vcmask 130048   ;;  %s4514_s18 = scalar_lea.vmem [#allocation11], %s4001_s19 }
  0xe7   : > { %826 = vadd.xlane.f32.xlu1 %v818_v5  ;;  %1070 = vmatprep.subr.bf16.mxu0 %v3118_v29  ;;  %v3130_v38 = vld [vmem:[%s4010_s7 + $0x34] ss:$12 sps:$4 sm:$0xff]   ;;  %v3133_v40 = vld [vmem:[%s4010_s7 + $0x30] ss:$12 sps:$4 sm:$0xff]   ;;  %v3136_v42 = vld [vmem:[%s4010_s7 + $0x38] ss:$12 sps:$4 sm:$0xff]  }
  0xe8   : > { %2839 = vmatpush3.bf16.msra.mxu1 %v3120_v30  ;;  %v3134_v41 = vld [vmem:[%s4010_s7 + $0x1c] ss:$12 sps:$4 sm:$0xff]   ;;  %1098 = vmatprep.mubr.bf16.mxu0 %v3635_v43  ;;  %v3137_v44 = vld [vmem:[%s4010_s7 + $0x18] ss:$12 sps:$4 sm:$0xff]   ;;  %v3140_v46 = vld [vmem:[%s4010_s7 + $0x20] ss:$12 sps:$4 sm:$0xff]  }
  0xe9   : > { %2840 = vmatprep.subr.bf16.mxu1 %v3124_v33  ;;  %v3138_v45 = vld [vmem:[%s4010_s7 + $0x4] ss:$12 sps:$4 sm:$0xff]   ;;  %v3141_v47 = vld [vmem:[%s4010_s7] ss:$12 sps:$4 sm:$0xff]   ;;  %v3142_v48 = vld [vmem:[%s4010_s7 + $0x8] ss:$12 sps:$4 sm:$0xff]  }
  0xea   : > { %824 = vadd.xlane.f32.xlu0 %v817_v6  ;;  %1071 = vmatpush1.bf16.msra.mxu0 %v3121_v31  ;;  %v2667_v63 = vld [vmem:[%s4512_s28] ss:$0 sm:$0xff]  ;;  %s4518_s8 = sld [smem:[#allocation29_spill]]  ;;  %s2346_s10 = scalar_lea.sflag [#allocation4], %s3987_s4 }
  0xeb   : > { %828 = vadd.xlane.f32.xlu1 %v819_v7  ;;  %1072 = vmatprep.subr.bf16.mxu0 %v3122_v32  ;;  %s4519_s21 = sld [smem:[#allocation52_spill]]  ;;  %p4520_p12 = scmp.ne.s32.totalorder %s4484_s14, 0 }
  0xec   : > { %2841 = vmatpush3.bf16.msra.mxu1 %v3124_v33  ;;  %s3639_s5 = smov [#allocation16]  }
  0xed   : > { %2842 = vmatprep.subr.bf16.mxu1 %v3128_v36 }
  0xee   : > { %1073 = vmatpush1.bf16.msra.mxu0 %v3125_v34 }
  0xef   : > { %1074 = vmatprep.subr.bf16.mxu0 %v3126_v35 }
  0xf0   : > { %2843 = vmatpush3.bf16.msra.mxu1 %v3128_v36 }
  0xf1   : > { %2844 = vmatprep.subr.bf16.mxu1 %v3132_v39 }
  0xf2   : > { %1075 = vmatpush1.bf16.msra.mxu0 %v3129_v37 }
  0xf3   : > { %1076 = vmatprep.subr.bf16.mxu0 %v3130_v38 }
  0xf4   : > { %2845 = vmatpush3.bf16.msra.mxu1 %v3132_v39 }
  0xf5   : > { %2846 = vmatprep.subr.bf16.mxu1 %v3136_v42 }
  0xf6   : > { %1077 = vmatpush1.bf16.msra.mxu0 %v3133_v40 }
  0xf7   : > { %1078 = vmatprep.subr.bf16.mxu0 %v3134_v41 }
  0xf8   : > { %2847 = vmatpush3.bf16.msra.mxu1 %v3136_v42 }
  0xf9   : > { %2848 = vmatprep.subr.bf16.mxu1 %v3140_v46 }
  0xfa   : > { %1079 = vmatpush1.bf16.msra.mxu0 %v3137_v44 }
  0xfb   : > { %1080 = vmatprep.subr.bf16.mxu0 %v3138_v45 }
  0xfc   : > { %2849 = vmatpush3.bf16.msra.mxu1 %v3140_v46 }
  0xfd   : > { %2850 = vmatprep.subr.bf16.mxu1 %v3142_v48 }
  0xfe   : > { %1081 = vmatpush1.bf16.msra.mxu0 %v3141_v47 }
 0x100   : > { %2851 = vmatpush3.bf16.msra.mxu1 %v3142_v48 }
 0x16f   : > { %v823_v10 = vpop.xlane.xlu0 %822 }
 0x170   : > { %v827_v11 = vpop.xlane.xlu1 %826  ;;  %v831_v12 = vmul.f32 0.0078125, %v823_v10 }
 0x171   : > { %v833_v13 = vmul.f32 0.0078125, %v827_v11 }
 0x172   : > { %v4081_v14 = vsub.f32 %v816_v4, %v831_v12  ;;  %v2668_v4 = vld [vmem:[%s4513_s29] ss:$0 sm:$0xff] }
 0x173   : > { %v4083_v15 = vsub.f32 %v818_v5, %v833_v13  ;;  %v825_v16 = vpop.xlane.xlu0 %824 }
 0x174   : > { %v829_v17 = vpop.xlane.xlu1 %828  ;;  %v832_v18 = vmul.f32 0.0078125, %v825_v16  ;;  %v839_v19 = vmul.f32 %v4081_v14, %v4081_v14 }
 0x175   : > { %v834_v20 = vmul.f32 0.0078125, %v829_v17  ;;  %v841_v23 = vmul.f32 %v4083_v15, %v4083_v15 }
 0x176   : > { %v4087_v21 = vsub.f32 %v817_v6, %v832_v18  ;;  %843 = vadd.xlane.f32.xlu0 %v839_v19  ;;  %v923_v18 = vlaneseq }
 0x177   : > { %v4089_v22 = vsub.f32 %v819_v7, %v834_v20 }
 0x178   : > { %v840_v24 = vmul.f32 %v4087_v21, %v4087_v21  ;;  %v4135_v19 = vshrl.u32 %v923_v18, 7 }
 0x179   : > { %v842_v25 = vmul.f32 %v4089_v22, %v4089_v22 }
 0x17a   : > { %847 = vadd.xlane.f32.xlu0 %v841_v23  ;;  %845 = vadd.xlane.f32.xlu1 %v840_v24  ;;  %v929_v20 = vsub.s32 1, %v4135_v19  ;;  %v921_v23 = vld [vmem:[%s4051_s25] sm:$0x7]  ;;  %v925_v33 = vsub.s32 0, %v4135_v19 }
 0x17c   : > { %v926_v46 = vrot.slane %v921_v23, %v925_v33 }
 0x17e   : > { %849 = vadd.xlane.f32.xlu1 %v842_v25  ;;  %v930_v25 = vrot.slane %v921_v23, %v929_v20 }
 0x1ff   : > { %v844_v49 = vpop.xlane.xlu0 %843 }
 0x200   : > { %v851_v50 = vmul.f32 0.0078125, %v844_v49 }
 0x202   : > { %v855_v51 = vadd.f32 1e-05, %v851_v50 }
 0x203   : > { %v846_v52 = vpop.xlane.xlu1 %845  ;;  %v848_v53 = vpop.xlane.xlu0 %847 }
 0x204   : > { %3191 = vrsqrt.f32 %v855_v51  ;;  %v852_v54 = vmul.f32 0.0078125, %v846_v52  ;;  %v853_v55 = vmul.f32 0.0078125, %v848_v53 }
 0x206   : > { %v856_v56 = vadd.f32 1e-05, %v852_v54  ;;  %v857_v57 = vadd.f32 1e-05, %v853_v55 }
 0x207   : > { %v850_v58 = vpop.xlane.xlu1 %849 }
 0x208   : > { %3193 = vrsqrt.f32 %v856_v56  ;;  %v854_v59 = vmul.f32 0.0078125, %v850_v58 }
 0x209   : > { %3195 = vrsqrt.f32 %v857_v57 }
 0x20a   : > { %v858_v60 = vadd.f32 1e-05, %v854_v59 }
 0x20c   : > { %3197 = vrsqrt.f32 %v858_v60 }
 0x211   : > { %v3192_v61 = vpop.eup %3191 }
 0x212   : > { %v863_v62 = vmul.f32 %v3192_v61, %v4081_v14 }
 0x214   : > { %v873_v3 = vmul.f32 %v2667_v63, %v863_v62 }
 0x215   : > { %v3194_v0 = vpop.eup %3193 }
 0x216   : > { %v3196_v1 = vpop.eup %3195  ;;  %v864_v2 = vmul.f32 %v3194_v0, %v4087_v21  ;;  %v883_v8 = vadd.f32 %v2668_v4, %v873_v3 }
 0x217   : > { %v865_v5 = vmul.f32 %v3196_v1, %v4083_v15  ;;  %v3636_v15 = vmov 0.0  }
 0x218   : > { %v874_v6 = vmul.f32 %v2667_v63, %v864_v2  ;;  %2856 = vmatprep.subr.bf16.mxu1 %v3636_v15  ;;  %2862 = vmatprep.subr.bf16.mxu0 %v3636_v15 }
 0x219   : > { %v3198_v7 = vpop.eup %3197  ;;  %v875_v11 = vmul.f32 %v2667_v63, %v865_v5 }
 0x21a   : > { %v884_v9 = vadd.f32 %v2668_v4, %v874_v6  ;;  %v866_v10 = vmul.f32 %v3198_v7, %v4089_v22  ;;  %v933_v22 = vsub.s32 2, %v4135_v19 }
 0x21b   : > { %v885_v14 = vadd.f32 %v2668_v4, %v875_v11 }
 0x21c   : > { %v887_v12 = vpack.c.bf16 %v884_v9, %v883_v8  ;;  %v876_v13 = vmul.f32 %v2667_v63, %v866_v10  ;;  %v934_v28 = vrot.slane %v921_v23, %v933_v22 }
 0x21e   : > { %1099 = vmatmul.mubr.bf16.vlgmr.msra.gmra.mxu0 %v887_v12  ;;  %2852 = vmatprep.mubr.bf16.mxu1 %v887_v12  ;;  %v886_v16 = vadd.f32 %v2668_v4, %v876_v13 }
 0x21f   : > { %1108 = vmatprep.mubr.bf16.mxu0 %v3635_v43 }
 0x220   : > { %v888_v17 = vpack.c.bf16 %v886_v16, %v885_v14 }
 0x222   : > { %2853 = vmatmul.mubr.bf16.vlgmr.msra.gmra.mxu1 %v888_v17 }
 0x223   : > { %2858 = vmatprep.mubr.msk.bf16.mxu1 %vm3637_vm0, %v3636_v15 }
 0x226   : > { %1109 = vmatmul.mubr.bf16.gmra.mxu0 %v888_v17 }
 0x227   : > { %2864 = vmatprep.mubr.msk.bf16.mxu0 %vm3637_vm0, %v3636_v15 }
 0x2de   : > { %v1100_v21 = vpop.f32.mrf.mxu0 }
 0x2df   : > { %v1101_v54 = vadd.f32 %v1100_v21, %v926_v46 }
 0x2e0   : > { %v1102_v24 = vpop.f32.mrf.mxu0 }
 0x2e1   : > { %v1103_v31 = vadd.f32 %v1102_v24, %v930_v25 }
 0x2e2   : > { %v1104_v26 = vpop.f32.mrf.mxu0  ;;  %v2854_v27 = vpop.f32.mrf.mxu1 }
 0x2e3   : > { %v4143_v36 = vadd.f32 %v2854_v27, %v934_v28  ;;  %v1105_v50 = vadd.f32 %v1104_v26, %v926_v46 }
 0x2e4   : > { %v1106_v29 = vpop.f32.mrf.mxu0  ;;  %v1153_v30 = vpop.f32.mrf.mxu1 }
 0x2e5   : > { %v1107_v32 = vadd.f32 %v1106_v29, %v930_v25  ;;  %v4147_v42 = vadd.f32 %v1153_v30, %v934_v28  ;;  %v1184_v57 = vpack.c.bf16 %v1105_v50, %v1101_v54  ;;  %v3091_v59 = vpack.i.bf16 %v1105_v50, %v1101_v54 }
 0x2e6   : > { %v1110_v34 = vpop.f32.mrf.mxu0  ;;  %v2855_v35 = vpop.f32.mrf.mxu1 }
 0x2e7   : > { %v3081_v37 = vpack.i.bf16 %v1107_v32, %v1103_v31  ;;  %v1204_v38 = vpack.c.bf16 %v1107_v32, %v1103_v31  ;;  %v4145_v39 = vadd.f32 %v2855_v35, %v934_v28  ;;  %v1111_v61 = vadd.f32 %v1110_v34, %v926_v46 }
 0x2e8   : > { %v1112_v40 = vpop.f32.mrf.mxu0  ;;  %v1156_v41 = vpop.f32.mrf.mxu1 }
 0x2e9   : > { %v3106_v44 = vpack.i.bf16 %v4145_v39, %v4143_v36  ;;  %v4151_v45 = vadd.f32 %v1156_v41, %v934_v28  ;;  %3082 = vrot.lane.b32.xlu0 %v3081_v37, %s3638_s16  ;;  %v1233_v48 = vsel %vm1228_vm1, %v1204_v38, 0  ;;  %v1113_v52 = vadd.f32 %v1112_v40, %v930_v25 }
 0x2ea   : > { %v1114_v47 = vpop.f32.mrf.mxu0  ;;  %2857 = vmatpush3.bf16.xpose.msra.mxu1 %v1233_v48  ;;  %v1225_v22 = vpack.c.bf16 %v4145_v39, %v4143_v36 }
 0x2eb   : > { %v3101_v49 = vpack.i.bf16 %v4151_v45, %v4147_v42  ;;  %2868 = vmatprep.subr.bf16.mxu1 %v3636_v15  ;;  %v1115_v60 = vadd.f32 %v1114_v47, %v926_v46  ;;  %v1224_v14 = vpack.c.bf16 %v4151_v45, %v4147_v42 }
 0x2ec   : > { %v1116_v51 = vpop.f32.mrf.mxu0 }
 0x2ed   : > { %v1117_v53 = vadd.f32 %v1116_v51, %v930_v25  ;;  %v3096_v62 = vpack.i.bf16 %v1115_v60, %v1111_v61  ;;  %v1185_v63 = vpack.c.bf16 %v1115_v60, %v1111_v61 }
 0x2ef   : > { %v3086_v55 = vpack.i.bf16 %v1117_v53, %v1113_v52  ;;  %v1205_v56 = vpack.c.bf16 %v1117_v53, %v1113_v52 }
 0x2f1   : > { %3087 = vrot.lane.b32.xlu1 %v3086_v55, %s3638_s16  ;;  %v1280_v58 = vsel %vm1228_vm1, %v1205_v56, 0  ;;  %2859 = vmatmul.mubr.msk.bf16.vlgmr.msra.gmra.mxu1 %vm1228_vm1, %v1184_v57 }
 0x2f2   : > { %2863 = vmatpush3.bf16.xpose.msra.mxu0 %v1280_v58  ;;  %2870 = vmatprep.mubr.msk.bf16.mxu1 %vm3637_vm0, %v3636_v15 }
 0x2f3   : > { %2874 = vmatprep.subr.bf16.mxu0 %v3636_v15 }
 0x2f5   : > { %3092 = vrot.lane.b32.xlu1 %v3091_v59, %s3638_s16 }
 0x2f9   : > { %3097 = vrot.lane.b32.xlu1 %v3096_v62, %s3638_s16  ;;  %2865 = vmatmul.mubr.msk.bf16.vlgmr.msra.gmra.mxu0 %vm1228_vm1, %v1185_v63 }
 0x2fa   : > { %2876 = vmatprep.mubr.msk.bf16.mxu0 %vm3637_vm0, %v3636_v15 }
 0x35b   : > { %v3083_v0 = vpop.permute.xlu0 %3082 }
 0x35c   : > { %v3085_v1 = vunpack.i.h.bf16 %v3083_v0  ;;  %v3084_v2 = vunpack.i.l.bf16 %v3083_v0 }
 0x35e   : > { %v1206_v3 = vpack.c.bf16 %v3085_v1, %v3084_v2 }
 0x360   : > { %v1327_v4 = vsel %vm1228_vm1, %v1206_v3, 0 }
 0x361   : > { %2869 = vmatpush3.bf16.xpose.msra.mxu1 %v1327_v4 }
 0x362   : > { %2880 = vmatprep.subr.bf16.mxu1 %v3636_v15 }
 0x363   : > { %v3088_v5 = vpop.permute.xlu1 %3087 }
 0x364   : > { %v3090_v6 = vunpack.i.h.bf16 %v3088_v5  ;;  %v3089_v7 = vunpack.i.l.bf16 %v3088_v5 }
 0x366   : > { %v1207_v8 = vpack.c.bf16 %v3090_v6, %v3089_v7 }
 0x367   : > { %v3093_v9 = vpop.permute.xlu1 %3092 }
 0x368   : > { %v3095_v10 = vunpack.i.h.bf16 %v3093_v9  ;;  %v3094_v11 = vunpack.i.l.bf16 %v3093_v9  ;;  %v1374_v12 = vsel %vm1228_vm1, %v1207_v8, 0 }
 0x369   : > { %2875 = vmatpush3.bf16.xpose.msra.mxu0 %v1374_v12 }
 0x36a   : > { %v1186_v13 = vpack.c.bf16 %v3095_v10, %v3094_v11  ;;  %2886 = vmatprep.subr.bf16.mxu0 %v3636_v15 }
 0x36b   : > { %v3098_v16 = vpop.permute.xlu1 %3097 }
 0x36c   : > { %v3100_v17 = vunpack.i.h.bf16 %v3098_v16  ;;  %v3099_v18 = vunpack.i.l.bf16 %v3098_v16  ;;  %2871 = vmatmul.mubr.msk.bf16.vlgmr.msra.gmra.mxu1 %vm1228_vm1, %v1186_v13 }
 0x36d   : > { %2881 = vmatpush3.bf16.msra.mxu1 %v1224_v14  ;;  %2882 = vmatprep.mubr.msk.bf16.mxu1 %vm3637_vm0, %v3636_v15 }
 0x36e   : > { %v1187_v21 = vpack.c.bf16 %v3100_v17, %v3099_v18  ;;  %2892 = vmatprep.subr.bf16.mxu1 %v3636_v15 }
 0x370   : > { %2877 = vmatmul.mubr.msk.bf16.vlgmr.msra.gmra.mxu0 %vm1228_vm1, %v1187_v21 }
 0x371   : > { %2887 = vmatpush3.bf16.msra.mxu0 %v1225_v22  ;;  %2888 = vmatprep.mubr.msk.bf16.mxu0 %vm3637_vm0, %v3636_v15 }
 0x372   : > { %2898 = vmatprep.subr.bf16.mxu0 %v3636_v15 }
 0x3b1   : > { %v1269_v23 = vpop.f32.mrf.mxu1 }
 0x3b2   : > { %v1418_v24 = vsel %vm1417_vm2, %v1269_v23, -inf }
 0x3b3   : > { %1419 = vmax.xlane.f32.xlu0 %v1418_v24  ;;  %v2860_v25 = vpop.f32.mrf.mxu1 }
 0x3b5   : > { %v1272_v26 = vpop.f32.mrf.mxu1 }
 0x3b6   : > { %v1421_v27 = vsel %vm1417_vm2, %v1272_v26, -inf }
 0x3b7   : > { %v2861_v28 = vpop.f32.mrf.mxu1  ;;  %1422 = vmax.xlane.f32.xlu1 %v1421_v27 }
 0x3b9   : > { %v1316_v29 = vpop.f32.mrf.mxu0 }
 0x3ba   : > { %v1424_v30 = vsel %vm1417_vm2, %v1316_v29, -inf }
 0x3bb   : > { %1425 = vmax.xlane.f32.xlu0 %v1424_v30  ;;  %v2866_v31 = vpop.f32.mrf.mxu0 }
 0x3bd   : > { %v1319_v32 = vpop.f32.mrf.mxu0 }
 0x3be   : > { %v1427_v34 = vsel %vm1417_vm2, %v1319_v32, -inf }
 0x3bf   : > { %1428 = vmax.xlane.f32.xlu0 %v1427_v34  ;;  %v2867_v35 = vpop.f32.mrf.mxu0 }
 0x42c   : > { %v1363_v37 = vpop.f32.mrf.mxu1 }
 0x42d   : > { %v1430_v38 = vsel %vm1417_vm2, %v1363_v37, -inf }
 0x42e   : > { %1431 = vmax.xlane.f32.xlu0 %v1430_v38  ;;  %v2872_v40 = vpop.f32.mrf.mxu1 }
 0x430   : > { %v1366_v41 = vpop.f32.mrf.mxu1  ;;  %v1410_v46 = vpop.f32.mrf.mxu0 }
 0x431   : > { %v1436_v47 = vsel %vm1417_vm2, %v1410_v46, -inf  ;;  %v1433_v48 = vsel %vm1417_vm2, %v1366_v41, -inf }
 0x432   : > { %v2878_v50 = vpop.f32.mrf.mxu0  ;;  %1437 = vmax.xlane.f32.xlu0 %v1436_v47  ;;  %1434 = vmax.xlane.f32.xlu1 %v1433_v48  ;;  %v2873_v51 = vpop.f32.mrf.mxu1 }
 0x434   : > { %v1413_v52 = vpop.f32.mrf.mxu0 }
 0x435   : > { %v1439_v53 = vsel %vm1417_vm2, %v1413_v52, -inf }
 0x436   : > { %v2879_v54 = vpop.f32.mrf.mxu0  ;;  %1440 = vmax.xlane.f32.xlu1 %v1439_v53 }
 0x43c   : > { %v1420_v55 = vpop.xlane.xlu0 %1419 }
 0x43d   : > { %v1442_v56 = vsub.f32 %v1269_v23, %v1420_v55 }
 0x43f   : > { %v1450_v57 = vmul.f32 1.442695, %v1442_v56 }
 0x440   : > { %v1423_v58 = vpop.xlane.xlu1 %1422 }
 0x441   : > { %3199 = vpow2.f32 %v1450_v57  ;;  %v1443_v59 = vsub.f32 %v1272_v26, %v1423_v58  ;;  %v3147_v57 = vld [vmem:[%s4017_s11 + $0x38] sm:$0xff]  }
 0x443   : > { %v1452_v60 = vmul.f32 1.442695, %v1443_v59 }
 0x444   : > { %v1426_v61 = vpop.xlane.xlu0 %1425 }
 0x445   : > { %v1444_v62 = vsub.f32 %v1316_v29, %v1426_v61  ;;  %3201 = vpow2.f32 %v1452_v60 }
 0x447   : > { %v1454_v63 = vmul.f32 1.442695, %v1444_v62 }
 0x448   : > { %v1429_v0 = vpop.xlane.xlu0 %1428 }
 0x449   : > { %3203 = vpow2.f32 %v1454_v63  ;;  %v1445_v1 = vsub.f32 %v1319_v32, %v1429_v0 }
 0x44b   : > { %v1456_v2 = vmul.f32 1.442695, %v1445_v1 }
 0x44d   : > { %3205 = vpow2.f32 %v1456_v2 }
 0x44e   : > { %v3200_v3 = vpop.eup %3199 }
 0x44f   : > { %v1466_v4 = vsel %vm1417_vm2, %v3200_v3, 0.0 }
 0x450   : > { %1467 = vadd.xlane.f32.xlu0 %v1466_v4 }
 0x452   : > { %v3202_v5 = vpop.eup %3201 }
 0x453   : > { %v1469_v6 = vsel %vm1417_vm2, %v3202_v5, 0.0 }
 0x454   : > { %1470 = vadd.xlane.f32.xlu1 %v1469_v6 }
 0x456   : > { %v3204_v7 = vpop.eup %3203 }
 0x457   : > { %v1472_v8 = vsel %vm1417_vm2, %v3204_v7, 0.0 }
 0x458   : > { %1473 = vadd.xlane.f32.xlu0 %v1472_v8 }
 0x45a   : > { %v3206_v9 = vpop.eup %3205 }
 0x45b   : > { %v1475_v10 = vsel %vm1417_vm2, %v3206_v9, 0.0 }
 0x45c   : > { %1476 = vadd.xlane.f32.xlu1 %v1475_v10  ;;  %v3144_v10 = vld [vmem:[%s4017_s11 + $0x10] sm:$0xff]  }
 0x4b7   : > { %v1432_v11 = vpop.xlane.xlu0 %1431 }
 0x4b8   : > { %v1446_v12 = vsub.f32 %v1363_v37, %v1432_v11  ;;  %v3145_v11 = vld [vmem:[%s4017_s11 + $0x8] sm:$0xff]  }
 0x4ba   : > { %v1458_v13 = vmul.f32 1.442695, %v1446_v12  ;;  %v3146_v12 = vld [vmem:[%s4017_s11] sm:$0xff]  }
 0x4bb   : > { %v1438_v14 = vpop.xlane.xlu0 %1437  ;;  %v1435_v16 = vpop.xlane.xlu1 %1434 }
 0x4bc   : > { %3207 = vpow2.f32 %v1458_v13  ;;  %v1448_v17 = vsub.f32 %v1410_v46, %v1438_v14  ;;  %v1447_v18 = vsub.f32 %v1366_v41, %v1435_v16  ;;  %v3149_v13 = vld [vmem:[%s4017_s11 + $0x28] sm:$0xff]   ;;  %v3150_v16 = vld [vmem:[%s4017_s11 + $0x20] sm:$0xff]  }
 0x4be   : > { %v1462_v21 = vmul.f32 1.442695, %v1448_v17  ;;  %v1460_v22 = vmul.f32 1.442695, %v1447_v18 }
 0x4bf   : > { %v1441_v23 = vpop.xlane.xlu1 %1440 }
 0x4c0   : > { %3209 = vpow2.f32 %v1462_v21  ;;  %v1449_v24 = vsub.f32 %v1413_v52, %v1441_v23 }
 0x4c1   : > { %3211 = vpow2.f32 %v1460_v22 }
 0x4c2   : > { %v1464_v25 = vmul.f32 1.442695, %v1449_v24 }
 0x4c4   : > { %3213 = vpow2.f32 %v1464_v25 }
 0x4c9   : > { %v3208_v26 = vpop.eup %3207 }
 0x4ca   : > { %v1478_v27 = vsel %vm1417_vm2, %v3208_v26, 0.0 }
 0x4cb   : > { %1479 = vadd.xlane.f32.xlu0 %v1478_v27 }
 0x4cd   : > { %v4200_v28 = vpop.eup %3209 }
 0x4ce   : > { %v3212_v29 = vpop.eup %3211  ;;  %v1484_v30 = vsel %vm1417_vm2, %v4200_v28, 0.0 }
 0x4cf   : > { %1485 = vadd.xlane.f32.xlu0 %v1484_v30  ;;  %v1481_v31 = vsel %vm1417_vm2, %v3212_v29, 0.0 }
 0x4d0   : > { %1482 = vadd.xlane.f32.xlu1 %v1481_v31 }
 0x4d1   : > { %v3214_v32 = vpop.eup %3213 }
 0x4d2   : > { %v1487_v34 = vsel %vm1417_vm2, %v3214_v32, 0.0 }
 0x4d4   : > { %1488 = vadd.xlane.f32.xlu1 %v1487_v34 }
 0x4d9   : > { %v1468_v35 = vpop.xlane.xlu0 %1467 }
 0x4da   : > { %3215 = vrcp.f32 %v1468_v35 }
 0x4dd   : > { %v1471_v37 = vpop.xlane.xlu1 %1470 }
 0x4de   : > { %3217 = vrcp.f32 %v1471_v37 }
 0x4e1   : > { %v1474_v38 = vpop.xlane.xlu0 %1473 }
 0x4e2   : > { %3219 = vrcp.f32 %v1474_v38 }
 0x4e5   : > { %3107 = vrot.lane.b32.xlu1 %v3106_v44, %s3638_s16  ;;  %3102 = vrot.lane.b32.xlu0 %v3101_v49, %s3638_s16  ;;  %v1477_v40 = vpop.xlane.xlu1 %1476 }
 0x4e6   : > { %3221 = vrcp.f32 %v1477_v40 }
 0x4e7   : > { %v3216_v41 = vpop.eup %3215 }
 0x4e8   : > { %v1498_v47 = vmul.f32 %v3216_v41, %v3200_v3 }
 0x4eb   : > { %v3218_v46 = vpop.eup %3217 }
 0x4ec   : > { %v1499_v48 = vmul.f32 %v3218_v46, %v3202_v5  ;;  %v3148_v5 = vld [vmem:[%s4017_s11 + $0x30] sm:$0xff]  }
 0x4ee   : > { %v1506_v50 = vpack.c.bf16 %v1499_v48, %v1498_v47 }
 0x4ef   : > { %v3220_v51 = vpop.eup %3219 }
 0x4f0   : > { %2883 = vmatmul.mubr.msk.bf16.vlgmr.msra.gmra.mxu1 %vm1417_vm2, %v1506_v50  ;;  %v1500_v39 = vmul.f32 %v3220_v51, %v3204_v7 }
 0x4f1   : > { %2894 = vmatprep.mubr.msk.bf16.mxu1 %vm3637_vm0, %v3636_v15 }
 0x4f3   : > { %v3222_v36 = vpop.eup %3221 }
 0x4f4   : > { %v1501_v44 = vmul.f32 %v3222_v36, %v3206_v9 }
 0x4f6   : > { %v1507_v52 = vpack.c.bf16 %v1501_v44, %v1500_v39  ;;  %v3255_v39 = vld [vmem:[%s4064_s24] sm:$0xff] }
 0x4f8   : > { %2889 = vmatmul.mubr.msk.bf16.vlgmr.msra.gmra.mxu0 %vm1417_vm2, %v1507_v52 }
 0x4f9   : > { %2900 = vmatprep.mubr.msk.bf16.mxu0 %vm3637_vm0, %v3636_v15  ;;  %v3143_v15 = vld [vmem:[%s4017_s11 + $0x18] sm:$0xff]  }
 0x554   : > { %v1480_v42 = vpop.xlane.xlu0 %1479 }
 0x555   : > { %3223 = vrcp.f32 %v1480_v42 }
 0x558   : > { %v1486_v45 = vpop.xlane.xlu0 %1485 }
 0x559   : > { %v1483_v49 = vpop.xlane.xlu1 %1482 }
 0x55a   : > { %3225 = vrcp.f32 %v1483_v49  ;;  %v2721_v49 = vld [vmem:[%s4514_s18] ss:$0 sm:$0xff] }
 0x55b   : > { %3227 = vrcp.f32 %v1486_v45 }
 0x55c   : > { %v3103_v53 = vpop.permute.xlu0 %3102 }
 0x55d   : > { %v3105_v54 = vunpack.i.h.bf16 %v3103_v53  ;;  %v3104_v55 = vunpack.i.l.bf16 %v3103_v53  ;;  %v1489_v56 = vpop.xlane.xlu1 %1488 }
 0x55e   : > { %3229 = vrcp.f32 %v1489_v56 }
 0x55f   : > { %v1226_v58 = vpack.c.bf16 %v3105_v54, %v3104_v55  ;;  %v3256_v54 = vld [vmem:[%s4064_s24 + $0x18] sm:$0xff] }
 0x561   : > { %v3108_v59 = vpop.permute.xlu1 %3107  ;;  %2893 = vmatpush3.bf16.msra.mxu1 %v1226_v58  ;;  %v3257_v58 = vld [vmem:[%s4064_s24 + $0x8] sm:$0xff] }
 0x562   : > { %v3110_v60 = vunpack.i.h.bf16 %v3108_v59  ;;  %v3109_v61 = vunpack.i.l.bf16 %v3108_v59  ;;  %2904 = vmatprep.subr.bf16.mxu1 %v3147_v57  ;;  %v3224_v63 = vpop.eup %3223 }
 0x563   : > { %v1502_v1 = vmul.f32 %v3224_v63, %v3208_v26 }
 0x564   : > { %v1227_v62 = vpack.c.bf16 %v3110_v60, %v3109_v61  ;;  %v3258_v60 = vld [vmem:[%s4064_s24 + $0x10] sm:$0xff] }
 0x566   : > { %2899 = vmatpush3.bf16.msra.mxu0 %v1227_v62 }
 0x567   : > { %v3226_v0 = vpop.eup %3225  ;;  %2916 = vmatprep.subr.bf16.mxu0 %v3143_v15 }
 0x568   : > { %v1503_v2 = vmul.f32 %v3226_v0, %v3212_v29  ;;  %v3228_v3 = vpop.eup %3227  ;;  %v3151_v0 = vld [vmem:[%s4025_s30 + $0x70] ss:$8 sps:$4 sm:$0xff]  }
 0x569   : > { %v1504_v7 = vmul.f32 %v3228_v3, %v4200_v28 }
 0x56a   : > { %v1508_v4 = vpack.c.bf16 %v1503_v2, %v1502_v1  ;;  %v3153_v1 = vld [vmem:[%s4025_s30 + $0x74] ss:$8 sps:$4 sm:$0xff]  }
 0x56b   : > { %v3230_v6 = vpop.eup %3229 }
 0x56c   : > { %2895 = vmatmul.mubr.msk.bf16.vlgmr.msra.gmra.mxu1 %vm1417_vm2, %v1508_v4  ;;  %v1505_v8 = vmul.f32 %v3230_v6, %v3214_v32 }
 0x56d   : > { %2905 = vmatpush3.bf16.msra.mxu1 %v3147_v57 }
 0x56e   : > { %v1509_v9 = vpack.c.bf16 %v1505_v8, %v1504_v7  ;;  %2906 = vmatprep.subr.bf16.mxu1 %v3148_v5 }
 0x570   : > { %2901 = vmatmul.mubr.msk.bf16.vlgmr.msra.gmra.mxu0 %vm1417_vm2, %v1509_v9 }
 0x571   : > { %2917 = vmatpush3.bf16.msra.mxu0 %v3143_v15  ;;  %2907 = vmatpush3.bf16.msra.mxu1 %v3148_v5 }
 0x572   : > { %2918 = vmatprep.subr.bf16.mxu0 %v3144_v10  ;;  %2908 = vmatprep.subr.bf16.mxu1 %v3149_v13 }
 0x575   : > { %2919 = vmatpush3.bf16.msra.mxu0 %v3144_v10  ;;  %2909 = vmatpush3.bf16.msra.mxu1 %v3149_v13 }
 0x576   : > { %2920 = vmatprep.subr.bf16.mxu0 %v3145_v11  ;;  %2910 = vmatprep.subr.bf16.mxu1 %v3150_v16 }
 0x579   : > { %2921 = vmatpush3.bf16.msra.mxu0 %v3145_v11  ;;  %2911 = vmatpush3.bf16.msra.mxu1 %v3150_v16 }
 0x57a   : > { %2922 = vmatprep.subr.bf16.mxu0 %v3146_v12  ;;  %2056 = vmatprep.subr.bf16.mxu1 %v3153_v1 }
 0x57d   : > { %2923 = vmatpush3.bf16.msra.mxu0 %v3146_v12 }
 0x5b0   : > { %v1547_v14 = vpop.f32.mrf.mxu1 }
 0x5b2   : > { %v2884_v17 = vpop.f32.mrf.mxu1 }
 0x5b4   : > { %v1550_v18 = vpop.f32.mrf.mxu1 }
 0x5b5   : > { %v1686_v21 = vpack.c.bf16 %v1550_v18, %v1547_v14 }
 0x5b6   : > { %v2885_v22 = vpop.f32.mrf.mxu1 }
 0x5b7   : > { %2924 = vmatprep.mubr.msk.bf16.mxu0 %vm1228_vm1, %v1686_v21  ;;  %v3156_v21 = vld [vmem:[%s4025_s30 + $0x64] ss:$8 sps:$4 sm:$0xff]   ;;  %v3154_v22 = vld [vmem:[%s4025_s30 + $0x60] ss:$8 sps:$4 sm:$0xff]  }
 0x5b8   : > { %v1591_v23 = vpop.f32.mrf.mxu0 }
 0x5ba   : > { %v2890_v24 = vpop.f32.mrf.mxu0 }
 0x5bb   : > { %v3157_v24 = vld [vmem:[%s4025_s30 + $0x50] ss:$8 sps:$4 sm:$0xff]  }
 0x5bc   : > { %v1594_v25 = vpop.f32.mrf.mxu0 }
 0x5bd   : > { %v1687_v26 = vpack.c.bf16 %v1594_v25, %v1591_v23  ;;  %v3159_v23 = vld [vmem:[%s4025_s30 + $0x54] ss:$8 sps:$4 sm:$0xff]   ;;  %v3162_v25 = vld [vmem:[%s4025_s30 + $0x44] ss:$8 sps:$4 sm:$0xff]  }
 0x5be   : > { %v2891_v27 = vpop.f32.mrf.mxu0 }
 0x5bf   : > { %2925 = vmatmul.mubr.msk.bf16.vlgmr.msra.gmra.mxu0 %vm1228_vm1, %v1687_v26  ;;  %v3160_v26 = vld [vmem:[%s4025_s30 + $0x40] ss:$8 sps:$4 sm:$0xff]   ;;  %v3163_v27 = vld [vmem:[%s4025_s30 + $0x30] ss:$8 sps:$4 sm:$0xff]  }
 0x62c   : > { %v1635_v28 = vpop.f32.mrf.mxu1 }
 0x62e   : > { %v2896_v29 = vpop.f32.mrf.mxu1 }
 0x62f   : > { %v3168_v29 = vld [vmem:[%s4025_s30 + $0x24] ss:$8 sps:$4 sm:$0xff]  }
 0x630   : > { %v1638_v30 = vpop.f32.mrf.mxu1  ;;  %v1679_v31 = vpop.f32.mrf.mxu0 }
 0x631   : > { %v1696_v32 = vpack.c.bf16 %v1638_v30, %v1635_v28  ;;  %v3165_v28 = vld [vmem:[%s4025_s30 + $0x34] ss:$8 sps:$4 sm:$0xff]   ;;  %v3166_v30 = vld [vmem:[%s4025_s30 + $0x20] ss:$8 sps:$4 sm:$0xff]  }
 0x632   : > { %v2897_v34 = vpop.f32.mrf.mxu1  ;;  %v2902_v35 = vpop.f32.mrf.mxu0 }
 0x633   : > { %2912 = vmatprep.mubr.msk.bf16.mxu1 %vm1228_vm1, %v1696_v32  ;;  %v3169_v32 = vld [vmem:[%s4025_s30 + $0x10] ss:$8 sps:$4 sm:$0xff]   ;;  %v3174_v34 = vld [vmem:[%s4025_s30 + $0x4] ss:$8 sps:$4 sm:$0xff]   ;;  %v3172_v35 = vld [vmem:[%s4025_s30] ss:$8 sps:$4 sm:$0xff]  }
 0x634   : > { %v1682_v37 = vpop.f32.mrf.mxu0 }
 0x635   : > { %v1697_v38 = vpack.c.bf16 %v1682_v37, %v1679_v31  ;;  %v3171_v31 = vld [vmem:[%s4025_s30 + $0x14] ss:$8 sps:$4 sm:$0xff]   ;;  %s2769_s30 = sshll.u32 %s4518_s8, 9 }
 0x636   : > { %v2903_v40 = vpop.f32.mrf.mxu0 }
 0x637   : > { %2913 = vmatmul.mubr.msk.bf16.vlgmr.msra.gmra.mxu1 %vm1228_vm1, %v1697_v38 }
 0x638   : > { %2088 = vmatprep.mubr.bf16.mxu1 %v3635_v43  ;;  %2057 = vmatpush1.bf16.msra.mxu1 %v3151_v0 }
 0x639   : > { %2058 = vmatprep.subr.bf16.mxu1 %v3156_v21  ;;  %v3186_v21 = vld [vmem:[%s4028_s20 + $0x10] sm:$0xff]  }
 0x63c   : > { %2059 = vmatpush1.bf16.msra.mxu1 %v3154_v22  ;;  %v3187_v22 = vld [vmem:[%s4028_s20 + $0x48] sm:$0xff]  }
 0x63d   : > { %2060 = vmatprep.subr.bf16.mxu1 %v3159_v23  ;;  %v3188_v23 = vld [vmem:[%s4028_s20 + $0x8] sm:$0xff]  }
 0x640   : > { %2061 = vmatpush1.bf16.msra.mxu1 %v3157_v24  ;;  %v3189_v24 = vld [vmem:[%s4028_s20 + $0x40] sm:$0xff]  }
 0x641   : > { %2062 = vmatprep.subr.bf16.mxu1 %v3162_v25  ;;  %v3190_v25 = vld [vmem:[%s4028_s20] sm:$0xff]  }
 0x644   : > { %2063 = vmatpush1.bf16.msra.mxu1 %v3160_v26  ;;  %v1964_v26 = vld [vmem:[%s4056_s26] sm:$0x3] }
 0x645   : > { %2064 = vmatprep.subr.bf16.mxu1 %v3165_v28  ;;  %v1973_v28 = vrot.slane %v1964_v26, %v929_v20 }
 0x648   : > { %2065 = vmatpush1.bf16.msra.mxu1 %v3163_v27  ;;  %v1969_v27 = vrot.slane %v1964_v26, %v925_v33 }
 0x649   : > { %2066 = vmatprep.subr.bf16.mxu1 %v3168_v29 }
 0x64c   : > { %2067 = vmatpush1.bf16.msra.mxu1 %v3166_v30 }
 0x64d   : > { %2068 = vmatprep.subr.bf16.mxu1 %v3171_v31 }
 0x650   : > { %2069 = vmatpush1.bf16.msra.mxu1 %v3169_v32 }
 0x651   : > { %2070 = vmatprep.subr.bf16.mxu1 %v3174_v34 }
 0x654   : > { %2071 = vmatpush1.bf16.msra.mxu1 %v3172_v35 }
 0x67f   : > { %v2926_v41 = vpop.f32.mrf.mxu0 }
 0x681   : > { %v1850_v46 = vpop.f32.mrf.mxu0 }
 0x683   : > { %v2927_v48 = vpop.f32.mrf.mxu0 }
 0x685   : > { %v1853_v42 = vpop.f32.mrf.mxu0 }
 0x6f7   : > { %v2914_v47 = vpop.f32.mrf.mxu1 }
 0x6f8   : > { %v1859_v53 = vadd.f32 %v2926_v41, %v2914_v47 }
 0x6f9   : > { %v1771_v50 = vpop.f32.mrf.mxu1 }
 0x6fa   : > { %v1851_v51 = vadd.f32 %v1850_v46, %v1771_v50  ;;  %v1867_v61 = vadd.f32 %v3258_v60, %v1859_v53 }
 0x6fb   : > { %v2915_v36 = vpop.f32.mrf.mxu1 }
 0x6fc   : > { %v1865_v44 = vadd.f32 %v3255_v39, %v1851_v51  ;;  %v1862_v52 = vadd.f32 %v2927_v48, %v2915_v36  ;;  %v4251_v63 = vadd.f32 %v2721_v49, %v1867_v61 }
 0x6fd   : > { %v1774_v45 = vpop.f32.mrf.mxu1 }
 0x6fe   : > { %v1868_v55 = vadd.f32 %v3256_v54, %v1862_v52  ;;  %v1854_v56 = vadd.f32 %v1853_v42, %v1774_v45  ;;  %v4240_v57 = vadd.f32 %v2721_v49, %v1865_v44  ;;  %v2722_v45 = vld [vmem:[%s791_s9] ss:$0 sm:$0xff]  ;;  %s4337_s9 = scalar_lea.hbm %s4519_s21, %s2769_s30 }
 0x700   : > { %v1866_v59 = vadd.f32 %v3257_v58, %v1854_v56  ;;  %1882 = vadd.xlane.f32.xlu1 %v4240_v57  ;;  %v4245_v15 = vadd.f32 %v2721_v49, %v1868_v55  ;;  %v2723_v55 = vld [vmem:[%s794_s17] ss:$0 sm:$0xff]  ;;  %s3487_s17 = sshll.u32 %s3639_s5, 4  ;;  %s3488_s17 = int_to_ptr.vmem [resolvable:$false] %s3487_s17 }
 0x701   : > { %s3489_s27 = scalar_lea.vmem %s3488_s17, 1024 }
 0x702   : > { %v4247_v62 = vadd.f32 %v2721_v49, %v1866_v59 }
 0x704   : > { %1888 = vadd.xlane.f32.xlu1 %v4245_v15  ;;  %1884 = vadd.xlane.f32.xlu0 %v4247_v62 }
 0x708   : > { %1886 = vadd.xlane.f32.xlu0 %v4251_v63 }
 0x789   : > { %v1883_v2 = vpop.xlane.xlu1 %1882 }
 0x78a   : > { %v1890_v3 = vmul.f32 0.0078125, %v1883_v2 }
 0x78c   : > { %v4257_v4 = vsub.f32 %v4240_v57, %v1890_v3 }
 0x78d   : > { %v1889_v5 = vpop.xlane.xlu1 %1888  ;;  %v1885_v6 = vpop.xlane.xlu0 %1884 }
 0x78e   : > { %v1893_v7 = vmul.f32 0.0078125, %v1889_v5  ;;  %v1891_v8 = vmul.f32 0.0078125, %v1885_v6  ;;  %v1898_v9 = vmul.f32 %v4257_v4, %v4257_v4 }
 0x790   : > { %v1895_v10 = vsub.f32 %v4247_v62, %v1891_v8  ;;  %1902 = vadd.xlane.f32.xlu0 %v1898_v9  ;;  %v4263_v12 = vsub.f32 %v4245_v15, %v1893_v7  ;;  %v3175_v8 = vld [vmem:[%s4028_s20 + $0x78] sm:$0xff]  }
 0x791   : > { %v1887_v11 = vpop.xlane.xlu0 %1886  ;;  %v3176_v9 = vld [vmem:[%s4028_s20 + $0x38] sm:$0xff]   ;;  %2808 = vmatprep.subr.bf16.mxu0 %v3175_v8 }
 0x792   : > { %v1892_v13 = vmul.f32 0.0078125, %v1887_v11  ;;  %v1899_v14 = vmul.f32 %v1895_v10, %v1895_v10  ;;  %v1901_v17 = vmul.f32 %v4263_v12, %v4263_v12  ;;  %2809 = vmatpush3.bf16.msra.mxu0 %v3176_v9  ;;  %v3178_v11 = vld [vmem:[%s4028_s20 + $0x30] sm:$0xff]  }
 0x794   : > { %v4266_v16 = vsub.f32 %v4251_v63, %v1892_v13  ;;  %1904 = vadd.xlane.f32.xlu1 %v1899_v14  ;;  %v3181_v13 = vld [vmem:[%s4028_s20 + $0x60] sm:$0xff]  }
 0x795   : > { %v3182_v14 = vld [vmem:[%s4028_s20 + $0x20] sm:$0xff]  }
 0x796   : > { %v1900_v18 = vmul.f32 %v4266_v16, %v4266_v16 }
 0x798   : > { %1908 = vadd.xlane.f32.xlu1 %v1901_v17  ;;  %1906 = vadd.xlane.f32.xlu0 %v1900_v18  ;;  %v3184_v17 = vld [vmem:[%s4028_s20 + $0x18] sm:$0xff]   ;;  %v3185_v18 = vld [vmem:[%s4028_s20 + $0x50] sm:$0xff]  }
 0x819   : > { %v1903_v37 = vpop.xlane.xlu0 %1902 }
 0x81a   : > { %v1910_v38 = vmul.f32 0.0078125, %v1903_v37 }
 0x81c   : > { %v1914_v40 = vadd.f32 1e-05, %v1910_v38 }
 0x81d   : > { %v1905_v41 = vpop.xlane.xlu1 %1904 }
 0x81e   : > { %3231 = vrsqrt.f32 %v1914_v40  ;;  %v1911_v46 = vmul.f32 0.0078125, %v1905_v41 }
 0x820   : > { %v1915_v47 = vadd.f32 1e-05, %v1911_v46 }
 0x821   : > { %v1909_v48 = vpop.xlane.xlu1 %1908  ;;  %v1907_v50 = vpop.xlane.xlu0 %1906 }
 0x822   : > { %3233 = vrsqrt.f32 %v1915_v47  ;;  %v1913_v51 = vmul.f32 0.0078125, %v1909_v48  ;;  %v1912_v36 = vmul.f32 0.0078125, %v1907_v50 }
 0x824   : > { %v1917_v39 = vadd.f32 1e-05, %v1913_v51  ;;  %v1916_v44 = vadd.f32 1e-05, %v1912_v36 }
 0x826   : > { %3235 = vrsqrt.f32 %v1917_v39 }
 0x827   : > { %3237 = vrsqrt.f32 %v1916_v44 }
 0x82b   : > { %v3232_v52 = vpop.eup %3231 }
 0x82c   : > { %v1922_v42 = vmul.f32 %v3232_v52, %v4257_v4 }
 0x82e   : > { %v1932_v54 = vmul.f32 %v2722_v45, %v1922_v42 }
 0x82f   : > { %v3234_v49 = vpop.eup %3233 }
 0x830   : > { %v1923_v53 = vmul.f32 %v3234_v49, %v1895_v10  ;;  %v1942_v60 = vadd.f32 %v2723_v55, %v1932_v54  ;;  %v3177_v10 = vld [vmem:[%s4028_s20 + $0x70] sm:$0xff]  }
 0x831   : > { %2810 = vmatprep.subr.bf16.mxu0 %v3177_v10 }
 0x832   : > { %v1933_v56 = vmul.f32 %v2722_v45, %v1923_v53  ;;  %2811 = vmatpush3.bf16.msra.mxu0 %v3178_v11 }
 0x833   : > { %v3236_v58 = vpop.eup %3235 }
 0x834   : > { %v3238_v59 = vpop.eup %3237  ;;  %v1943_v61 = vadd.f32 %v2723_v55, %v1933_v56  ;;  %v1925_v0 = vmul.f32 %v3236_v58, %v4263_v12  ;;  %v3179_v12 = vld [vmem:[%s4028_s20 + $0x68] sm:$0xff]  }
 0x835   : > { %v1924_v1 = vmul.f32 %v3238_v59, %v4266_v16  ;;  %2812 = vmatprep.subr.bf16.mxu0 %v3179_v12  ;;  %v3183_v16 = vld [vmem:[%s4028_s20 + $0x58] sm:$0xff]  }
 0x836   : > { %v1946_v2 = vpack.c.bf16 %v1943_v61, %v1942_v60  ;;  %v1935_v3 = vmul.f32 %v2722_v45, %v1925_v0 }
 0x837   : > { %v1934_v4 = vmul.f32 %v2722_v45, %v1924_v1 }
 0x838   : > { %2089 = vmatmul.mubr.bf16.vlgmr.msra.gmra.mxu1 %v1946_v2  ;;  %v1945_v6 = vadd.f32 %v2723_v55, %v1935_v3 }
 0x839   : > { %2098 = vmatprep.mubr.bf16.mxu1 %v3635_v43  ;;  %v1944_v5 = vadd.f32 %v2723_v55, %v1934_v4  ;;  %v3180_v43 = vld [vmem:[%s4028_s20 + $0x28] sm:$0xff]   ;;  %s2360_s20 = sshll.u32 %s4064_s24, 4  ;;  %s4339_s20 = int_to_ptr.vmem [resolvable:$true] %s2360_s20 }
 0x83a   : > { %2813 = vmatpush3.bf16.msra.mxu0 %v3180_v43  ;;  %s3483_s2 = scalar_lea.vmem %s4339_s20, 512  ;;  %p3490_p11 = scmp.lt.s32.totalorder %s4339_s20, %s3488_s17 }
 0x83b   : > { %v1947_v7 = vpack.c.bf16 %v1945_v6, %v1944_v5  ;;  %2814 = vmatprep.subr.bf16.mxu0 %v3181_v13  ;;  %p3484_p10 = scmp.ne.s32.totalorder %s4339_s20, %s3483_s2  ;;  %p3491_p7 = scmp.lt.s32.totalorder %s3489_s27, %s3483_s2 }
 0x83d   : > { %p3485_p1 = pnand %p3484_p10, %p4520_p12  ;;  %p3492_p0 = por %p3491_p7, %p3490_p11 }
 0x83e   : > { %2815 = vmatpush3.bf16.msra.mxu0 %v3182_v14 }
 0x83f   : > { %2816 = vmatprep.subr.bf16.mxu0 %v3183_v16  ;;  %p3486_p13 = pneg %p3485_p1 }
 0x840   : > { %2099 = vmatmul.mubr.bf16.gmra.mxu1 %v1947_v7 }
 0x841   : > { %p3493_p6 = pnand %p3492_p0, %p3486_p13 }
 0x842   : > { %2817 = vmatpush3.bf16.msra.mxu0 %v3184_v17 }
 0x843   : > { %2818 = vmatprep.subr.bf16.mxu0 %v3185_v18 }
 0x846   : > { %2819 = vmatpush3.bf16.msra.mxu0 %v3186_v21 }
 0x847   : > { %2820 = vmatprep.subr.bf16.mxu0 %v3187_v22 }
 0x84a   : > { %2821 = vmatpush3.bf16.msra.mxu0 %v3188_v23 }
 0x84b   : > { %2822 = vmatprep.subr.bf16.mxu0 %v3189_v24 }
 0x84e   : > { %2823 = vmatpush3.bf16.msra.mxu0 %v3190_v25 }
 0x8f8   : > { %v2090_v29 = vpop.f32.mrf.mxu1 }
 0x8f9   : > { %v2091_v30 = vadd.f32 %v2090_v29, %v1969_v27 }
 0x8fa   : > { %v2092_v31 = vpop.f32.mrf.mxu1 }
 0x8fb   : > { %v2093_v32 = vadd.f32 %v2092_v31, %v1973_v28  ;;  %v2117_v34 = vmul.f32 0.70710677, %v2091_v30  ;;  %v2109_v2 = vmul.f32 0.5, %v2091_v30  ;;  %v2740_v30 = vld [vmem:[%s801_s6] ss:$0 sm:$0xff] }
 0x8fc   : > { %v2094_v35 = vpop.f32.mrf.mxu1 }
 0x8fd   : > { %v2118_v37 = vmul.f32 0.70710677, %v2093_v32  ;;  %v2095_v38 = vadd.f32 %v2094_v35, %v1969_v27  ;;  %v2110_v61 = vmul.f32 0.5, %v2093_v32 }
 0x8fe   : > { %v2096_v40 = vpop.f32.mrf.mxu1 }
 0x8ff   : > { %3239 = verf.f32 %v2118_v37  ;;  %v2119_v41 = vmul.f32 0.70710677, %v2095_v38  ;;  %v2097_v46 = vadd.f32 %v2096_v40, %v1973_v28  ;;  %v2111_v60 = vmul.f32 0.5, %v2095_v38 }
 0x900   : > { %3241 = verf.f32 %v2117_v34  ;;  %v2100_v47 = vpop.f32.mrf.mxu1 }
 0x901   : > { %3243 = verf.f32 %v2119_v41  ;;  %v2120_v48 = vmul.f32 0.70710677, %v2097_v46  ;;  %v2101_v33 = vadd.f32 %v2100_v47, %v1969_v27  ;;  %v2112_v0 = vmul.f32 0.5, %v2097_v46 }
 0x902   : > { %v2102_v50 = vpop.f32.mrf.mxu1 }
 0x903   : > { %3245 = verf.f32 %v2120_v48  ;;  %v2103_v19 = vadd.f32 %v2102_v50, %v1973_v28  ;;  %v2121_v20 = vmul.f32 0.70710677, %v2101_v33  ;;  %v2113_v22 = vmul.f32 0.5, %v2101_v33 }
 0x904   : > { %v2104_v51 = vpop.f32.mrf.mxu1 }
 0x905   : > { %v2122_v36 = vmul.f32 0.70710677, %v2103_v19  ;;  %v2105_v39 = vadd.f32 %v2104_v51, %v1969_v27  ;;  %v2114_v17 = vmul.f32 0.5, %v2103_v19 }
 0x906   : > { %v2106_v44 = vpop.f32.mrf.mxu1 }
 0x907   : > { %3247 = verf.f32 %v2122_v36  ;;  %v2123_v52 = vmul.f32 0.70710677, %v2105_v39  ;;  %v2107_v42 = vadd.f32 %v2106_v44, %v1973_v28  ;;  %v2115_v16 = vmul.f32 0.5, %v2105_v39 }
 0x908   : > { %3249 = verf.f32 %v2121_v20 }
 0x909   : > { %3251 = verf.f32 %v2123_v52  ;;  %v2124_v45 = vmul.f32 0.70710677, %v2107_v42  ;;  %v2116_v18 = vmul.f32 0.5, %v2107_v42 }
 0x90b   : > { %3253 = verf.f32 %v2124_v45 }
 0x90c   : > { %v3240_v49 = vpop.eup %3239 }
 0x90d   : > { %v3242_v53 = vpop.eup %3241  ;;  %v2134_v55 = vadd.f32 1.0, %v3240_v49 }
 0x90e   : > { %v3244_v54 = vpop.eup %3243  ;;  %v2133_v59 = vadd.f32 1.0, %v3242_v53 }
 0x90f   : > { %v2135_v56 = vadd.f32 1.0, %v3244_v54  ;;  %v2142_v4 = vmul.f32 %v2134_v55, %v2110_v61 }
 0x910   : > { %v3246_v58 = vpop.eup %3245  ;;  %v2141_v7 = vmul.f32 %v2133_v59, %v2109_v2 }
 0x911   : > { %v2136_v1 = vadd.f32 1.0, %v3246_v58  ;;  %v2143_v3 = vmul.f32 %v2135_v56, %v2111_v60 }
 0x913   : > { %v2144_v5 = vmul.f32 %v2136_v1, %v2112_v0  ;;  %v2149_v11 = vpack.c.bf16 %v2143_v3, %v2141_v7 }
 0x914   : > { %v3248_v6 = vpop.eup %3247 }
 0x915   : > { %v3250_v8 = vpop.eup %3249  ;;  %v2150_v9 = vpack.c.bf16 %v2144_v5, %v2142_v4  ;;  %v2138_v12 = vadd.f32 1.0, %v3248_v6 }
 0x916   : > { %v3252_v10 = vpop.eup %3251  ;;  %v2137_v14 = vadd.f32 1.0, %v3250_v8 }
 0x917   : > { %v2139_v43 = vadd.f32 1.0, %v3252_v10  ;;  %2320 = vmatprep.mubr.bf16.mxu0 %v2150_v9  ;;  %v2146_v24 = vmul.f32 %v2138_v12, %v2114_v17 }
 0x918   : > { %v3254_v13 = vpop.eup %3253  ;;  %2321 = vmatmul.mubr.bf16.vlgmr.msra.gmra.mxu0 %v2149_v11  ;;  %v2145_v26 = vmul.f32 %v2137_v14, %v2113_v22 }
 0x919   : > { %v2140_v21 = vadd.f32 1.0, %v3254_v13  ;;  %v2147_v23 = vmul.f32 %v2139_v43, %v2115_v16 }
 0x91b   : > { %v2148_v25 = vmul.f32 %v2140_v21, %v2116_v18  ;;  %v2151_v28 = vpack.c.bf16 %v2147_v23, %v2145_v26 }
 0x91d   : > { %v2152_v27 = vpack.c.bf16 %v2148_v25, %v2146_v24 }
 0x91f   : > { %2328 = vmatprep.mubr.bf16.mxu0 %v2152_v27 }
 0x920   : > { %2329 = vmatmul.mubr.bf16.gmra.mxu0 %v2151_v28 }
 0x9d8   : > { %v2824_v29 = vpop.f32.mrf.mxu0 }
 0x9da   : > { %v2825_v31 = vpop.f32.mrf.mxu0 }
 0x9db   : > { %v2826_v32 = vadd.f32 %v2825_v31, %v2824_v29 }
 0x9dc   : > { %v2827_v34 = vpop.f32.mrf.mxu0 }
 0x9dd   : > { %v2323_v35 = vadd.f32 %v2826_v32, %v2740_v30 }
 0x9de   : > { %v2828_v37 = vpop.f32.mrf.mxu0 }
 0x9df   : > { %v2337_v38 = vadd.f32 %v2323_v35, %v4240_v57  ;;  %v2829_v40 = vadd.f32 %v2828_v37, %v2827_v34 }
 0x9e0   : > { %v2830_v41 = vpop.f32.mrf.mxu0 }
 0x9e1   : > { %2341 = vst [vmem:[%s4064_s24] sm:$0xff] %v2337_v38  ;;  %v2326_v46 = vadd.f32 %v2829_v40, %v2740_v30 }
 0x9e2   : > { %v2831_v47 = vpop.f32.mrf.mxu0 }
 0x9e3   : > { %v2338_v48 = vadd.f32 %v2326_v46, %v4247_v62  ;;  %v2832_v33 = vadd.f32 %v2831_v47, %v2830_v41 }
 0x9e4   : > { %v2833_v50 = vpop.f32.mrf.mxu0 }
 0x9e5   : > { %2342 = vst [vmem:[%s4064_s24 + $0x8] sm:$0xff] %v2338_v48  ;;  %v2331_v19 = vadd.f32 %v2832_v33, %v2740_v30 }
 0x9e6   : > { %v2834_v20 = vpop.f32.mrf.mxu0 }
 0x9e7   : > { %v2339_v51 = vadd.f32 %v2331_v19, %v4251_v63  ;;  %v2835_v36 = vadd.f32 %v2834_v20, %v2833_v50 }
 0x9e9   : > { %2343 = vst [vmem:[%s4064_s24 + $0x10] sm:$0xff] %v2339_v51  ;;  %v2334_v57 = vadd.f32 %v2835_v36, %v2740_v30 }
 0x9eb   : > { %v2340_v62 = vadd.f32 %v2334_v57, %v4245_v15 }
 0x9ed   : > { %2344 = vst [vmem:[%s4064_s24 + $0x18] sm:$0xff] %v2340_v62 }
 0x9ee   : > { %3496 = shalt.err (!%p3493_p6)
}
 0x9ef   : > { %s3497_s15 = scalar_lea.hbm %s4337_s9, 512  ;;  %s3501_s24 = scalar_lea.hbm %s4519_s21, 1024 }
 0x9f0   : > { %p3498_p2 = scmp.ne.s32.totalorder %s4337_s9, %s3497_s15  ;;  %p3502_p5 = scmp.lt.s32.totalorder %s4337_s9, %s4519_s21 }
 0x9f1   : > { %p3503_p9 = scmp.lt.s32.totalorder %s3501_s24, %s3497_s15 }
 0x9f2   : > { %p3499_p3 = pnand %p3498_p2, %p4520_p12 }
 0x9f3   : > { %p3504_p4 = por %p3503_p9, %p3502_p5 }
 0x9f4   : > { %p3500_p8 = pneg %p3499_p3 }
 0x9f6   : > { %p3505_p10 = pnand %p3504_p4, %p3500_p8 }
 0x9f8   : > { %3508 = shalt.err (!%p3505_p10)
}
 0x9f9   : > { %s3640_s16 = smov 128   ;;  %s3641_s18 = smov 8  }
 0x9fa   : > { %2948 = dma.vmem_to_hbm [thread:$0]  (%p4520_p12), %s4339_s20, 512, %s4337_s9, %s2346_s10, %s3640_s16, %s3640_s16, %s3641_s18  }
 0x9fb PF: > { %s4521_s23 = sld [smem:[#allocation32_spill]] }
 0x9fc   : > { %s4522_s3 = sld [smem:[#allocation25_spill]] }
 0x9fd   : > { %s4523_s13 = sld [smem:[#allocation38_spill]] }
 0xa01   : > { %p2980_p1 = scmp.ge.s32.totalorder %s4521_s23, 2 }
 0xa02   : > { %s2375_s19 = sand.u32 1, %s4522_s3  }
 0xa03   : > { %p4524_p13 = scmp.ne.s32.totalorder %s4523_s13, 0  ;;  %s2376_s25 = scalar_lea.sflag [#allocation4], %s2375_s19 }
 0xa05   : > { %p2976_p11 = pnand %p2980_p1, %p4524_p13 }
 0xa07   : > { %p2977_p7 = pneg %p2976_p11 }
 0xa09   : > { %3574 = dma.done.wait (%p2977_p7), %s2376_s25, 512  }
 0xa0a   : > { %3576 = vsyncadd (%p2977_p7), %s2376_s25, 4294966784  ;;  %s41_s18 = sadd.s32 1, %s4521_s23   ;;  %s4525_s25 = sld [smem:[#allocation23_spill]] }
 0xa0b   : > { %p38_p0 = scmp.ge.s32.totalorder %s41_s18, 6   ;;  %s4526_s26 = sld [smem:[#allocation24_spill]] }
 0xa0c   : > { %s4527_s27 = sld [smem:[#allocation36_spill]] }
 0xa0d   : > { %s4528_s28 = sld [smem:[#allocation26_spill]] }
 0xa0e   : > { %s4529_s29 = sld [smem:[#allocation27_spill]] }
 0xa0f   : > { %s4530_s30 = sld [smem:[#allocation37_spill]]  ;;  %40 = sbr.rel (!%p38_p0) target bundleno = 32 (0x20), region = 222 }
 0xa10   : > { %s4531_s14 = sld [smem:[#allocation30_spill]] }
 0xa11   : > { %s4532_s15 = sld [smem:[#allocation31_spill]] }
 0xa12   : > { %s4533_s16 = sld [smem:[#allocation34_spill]] }
 0xa13   : > { %s4534_s17 = sld [smem:[#allocation35_spill]] }
 0xa14   :  { %2381 = vsyncpa [#allocation3], 1 }
 0xa15   :  { %2383 = vsyncpa [#allocation3 + $0x1], 1 }
 0xa16   :  { %2384 = vsyncpa [#allocation6], 1 }
 0xa17   :  { %2386 = vsyncpa [#allocation6 + $0x1], 1 }
 0xa18   :  { %2387 = vsyncpa [#allocation9], 1 }
 0xa19   :  { %2389 = vsyncpa [#allocation9 + $0x1], 1 }
 0xa1a   :  { %2390 = vsyncpa [#allocation12], 1 }
 0xa1b   :  { %2392 = vsyncpa [#allocation12 + $0x1], 1 }
 0xa1c   :  { %2393 = vsyncpa [#allocation15], 1 }
 0xa1d   :  { %2395 = vsyncpa [#allocation15 + $0x1], 1 }
 0xa1e   :  { %2396 = vsyncpa [#allocation4], 1 }
 0xa1f   :  { %2398 = vsyncpa [#allocation4 + $0x1], 1 }

</bundles_post_ra>
